<compile_context>
chip_gen: v7x
topology: tpu7x:2x2x1
jax: 0.10.0
libtpu: 0.0.40
codegen_flags: <defaults>
</compile_context>

<pallas_src>
import math

import jax
import jax.numpy as jnp
from jax.experimental import pallas as pl
from jax.experimental.pallas import tpu as pltpu

LN_EPS = 1e-5
INV_SQRT2 = 1.0 / math.sqrt(2.0)


def _layernorm(x, gamma, beta):
    # Fused single-pass variance: E[x^2] - mu^2 (one XLU reduce saved).
    mu = jnp.mean(x, axis=-1, keepdims=True)
    ms = jnp.mean(x * x, axis=-1, keepdims=True)
    var = ms - mu * mu
    return (x - mu) * jax.lax.rsqrt(var + LN_EPS) * gamma + beta


def cross_modal_attention_kernel(q_ref, c_ref,
                                 wvo_ref, bvo_ref,
                                 g_ref, b_ref,
                                 w1_ref, b1_ref,
                                 w2_ref, b2_ref,
                                 o_ref):
    q = q_ref[...].astype(jnp.float32)

    # nn.MultiheadAttention with seq_len == 1 for query and key/value:
    # softmax over the singleton key axis is identically 1 for every head, so
    # attended == out_proj(v_proj(context)) exactly.  The two linears are
    # folded offline into W_vo / b_vo -> a single bf16 MXU matmul here.
    attended = jnp.dot(c_ref[...].astype(jnp.bfloat16), wvo_ref[...],
                       preferred_element_type=jnp.float32) + bvo_ref[...]

    gamma = g_ref[...]
    beta = b_ref[...]
    # attended = norm(query + dropout(attended))           (dropout = identity)
    x1 = _layernorm(q + attended, gamma, beta)
    # attended = norm(query + dropout(attended))  -- second residual add of
    # `query`, exactly as in the PyTorch forward.
    x2 = _layernorm(q + x1, gamma, beta)

    # FFN: Linear(D, 4D) -> GELU(exact, erf) -> Linear(4D, D); bf16 operands,
    # f32 accumulation; GELU kept in f32 (EUP erf path).
    h = jnp.dot(x2.astype(jnp.bfloat16), w1_ref[...],
                preferred_element_type=jnp.float32) + b1_ref[...]
    h = 0.5 * h * (1.0 + jax.lax.erf(h * INV_SQRT2))
    ffn = jnp.dot(h.astype(jnp.bfloat16), w2_ref[...],
                  preferred_element_type=jnp.float32) + b2_ref[...]

    # output = attended + 0.5 * dropout(ffn(attended))
    o_ref[...] = (x2 + 0.5 * ffn).astype(o_ref.dtype)


def cross_modal_attention(query, context, params):
    B, D = query.shape
    H = params["w1_t"].shape[1]
    vmem = pl.BlockSpec(memory_space=pltpu.MemorySpace.VMEM)
    args = (query, context,
            params["w_vo"], params["b_vo"],
            params["ln_gamma"], params["ln_beta"],
            params["w1_t"], params["b1"],
            params["w2_t"], params["b2"])

    # The kernel is DMA-bound: cost ~ bf16 weight bytes.  Advertise that so
    # XLA can overlap it with neighbouring ops.
    weight_bytes = 2 * (D * D + D * H + H * D)            # bf16 weights
    act_bytes = 4 * (3 * B * D + 2 * D + H + 2 * D)       # f32 acts + biases
    cost = pl.CostEstimate(
        flops=2 * B * D * D + 4 * B * D * H,
        transcendentals=B * H,
        bytes_accessed=weight_bytes + act_bytes,
    )

    return pl.pallas_call(
        cross_modal_attention_kernel,
        out_shape=jax.ShapeDtypeStruct((B, D), query.dtype),
        in_specs=[vmem] * len(args),
        out_specs=vmem,
        cost_estimate=cost,
    )(*args)


def init_params(key, embed_dim=256):
    """Deterministic parameter init mirroring the module's shapes/init scheme,
    with the V-proj/out-proj fold and bf16 weight storage applied."""
    D = embed_dim
    H = 4 * D
    ks = jax.random.split(key, 6)

    # attention.in_proj_weight: xavier_uniform over [3D, D]; in_proj_bias = 0.
    bound_in = math.sqrt(6.0 / (3 * D + D))
    in_proj_w = jax.random.uniform(ks[0], (3 * D, D), jnp.float32,
                                   -bound_in, bound_in)
    wv = in_proj_w[2 * D:]                  # V slice, PyTorch layout (out, in)
    bv = jnp.zeros((1, D), jnp.float32)

    # attention.out_proj: xavier_uniform weight, zero bias.
    bound_o = math.sqrt(6.0 / (D + D))
    wo = jax.random.uniform(ks[1], (D, D), jnp.float32, -bound_o, bound_o)
    bo = jnp.zeros((1, D), jnp.float32)

    # Fold: attended = (c @ wv.T + bv) @ wo.T + bo
    #                = c @ (wv.T @ wo.T) + (bv @ wo.T + bo)
    w_vo = (wv.T @ wo.T).astype(jnp.bfloat16)
    b_vo = bv @ wo.T + bo                                   # f32 bias

    # LayerNorm(embed_dim) default affine params.
    gamma = jnp.ones((1, D), jnp.float32)
    beta = jnp.zeros((1, D), jnp.float32)

    # FFN linears, PyTorch-default-style uniform(-1/sqrt(fan_in), +).
    b1_bound = 1.0 / math.sqrt(D)
    w1 = jax.random.uniform(ks[2], (H, D), jnp.float32, -b1_bound, b1_bound)
    b1 = jax.random.uniform(ks[3], (1, H), jnp.float32, -b1_bound, b1_bound)
    b2_bound = 1.0 / math.sqrt(H)
    w2 = jax.random.uniform(ks[4], (D, H), jnp.float32, -b2_bound, b2_bound)
    b2 = jax.random.uniform(ks[5], (1, D), jnp.float32, -b2_bound, b2_bound)

    return dict(w_vo=w_vo, b_vo=b_vo,
                ln_gamma=gamma, ln_beta=beta,
                w1_t=w1.T.astype(jnp.bfloat16), b1=b1,
                w2_t=w2.T.astype(jnp.bfloat16), b2=b2)


def reference(query, context, p):
    """Plain-JAX reference with identical math (bf16 operands, f32 accum)."""
    q = query.astype(jnp.float32)
    attended = jnp.dot(context.astype(jnp.bfloat16), p["w_vo"],
                       preferred_element_type=jnp.float32) + p["b_vo"]
    x1 = _layernorm(q + attended, p["ln_gamma"], p["ln_beta"])
    x2 = _layernorm(q + x1, p["ln_gamma"], p["ln_beta"])
    h = jnp.dot(x2.astype(jnp.bfloat16), p["w1_t"],
                preferred_element_type=jnp.float32) + p["b1"]
    h = 0.5 * h * (1.0 + jax.lax.erf(h * INV_SQRT2))
    ffn = jnp.dot(h.astype(jnp.bfloat16), p["w2_t"],
                  preferred_element_type=jnp.float32) + p["b2"]
    return x2 + 0.5 * ffn


if __name__ == "__main__":
    B, D = 8, 256  # module default embed_dim=256, num_heads=8
    key = jax.random.PRNGKey(0)
    kq, kc, kp = jax.random.split(key, 3)
    query = jax.random.normal(kq, (B, D), jnp.float32)
    context = jax.random.normal(kc, (B, D), jnp.float32)
    params = init_params(kp, embed_dim=D)

    out = cross_modal_attention(query, context, params)
    out = jax.block_until_ready(out)

    ref = reference(query, context, params)
    assert out.shape == (B, D)
    assert bool(jnp.all(jnp.isfinite(out)))
    assert jnp.allclose(out, ref, rtol=2e-3, atol=2e-3)
    print("KERNEL_OK")
</pallas_src>

<mosaic_0001>
module attributes {stable_mosaic.version = 11 : i64} {
  func.func @cross_modal_attention_kernel(%arg0: memref<8x256xf32, #tpu.memory_space<vmem>>, %arg1: memref<8x256xf32, #tpu.memory_space<vmem>>, %arg2: memref<256x256xbf16, #tpu.memory_space<vmem>>, %arg3: memref<1x256xf32, #tpu.memory_space<vmem>>, %arg4: memref<1x256xf32, #tpu.memory_space<vmem>>, %arg5: memref<1x256xf32, #tpu.memory_space<vmem>>, %arg6: memref<256x1024xbf16, #tpu.memory_space<vmem>>, %arg7: memref<1x1024xf32, #tpu.memory_space<vmem>>, %arg8: memref<1024x256xbf16, #tpu.memory_space<vmem>>, %arg9: memref<1x256xf32, #tpu.memory_space<vmem>>, %arg10: memref<8x256xf32, #tpu.memory_space<vmem>>) attributes {dimension_semantics = [], scalar_prefetch = 0 : i64, scratch_operands = 0 : i64, tpu.core_type = #tpu.core_type<tc>} {
    %c0 = arith.constant 0 : index
    %c0_0 = arith.constant 0 : index
    %0 = vector.load %arg0[%c0, %c0_0] : memref<8x256xf32, #tpu.memory_space<vmem>>, vector<8x256xf32>
    %c0_1 = arith.constant 0 : index
    %c0_2 = arith.constant 0 : index
    %1 = vector.load %arg1[%c0_1, %c0_2] : memref<8x256xf32, #tpu.memory_space<vmem>>, vector<8x256xf32>
    %2 = arith.truncf %1 : vector<8x256xf32> to vector<8x256xbf16>
    %c0_3 = arith.constant 0 : index
    %c0_4 = arith.constant 0 : index
    %3 = vector.load %arg2[%c0_3, %c0_4] : memref<256x256xbf16, #tpu.memory_space<vmem>>, vector<256x256xbf16>
    %cst = arith.constant dense<0.000000e+00> : vector<8x256xf32>
    %4 = tpu.matmul %2, %3, %cst {dimension_numbers = #tpu.dot_dimension_numbers<[1], [0], [0], [1], [0, 0, 1, 1], [], []>} : vector<8x256xbf16>, vector<256x256xbf16>, vector<8x256xf32> -> vector<8x256xf32>
    %c0_5 = arith.constant 0 : index
    %c0_6 = arith.constant 0 : index
    %5 = vector.load %arg3[%c0_5, %c0_6] : memref<1x256xf32, #tpu.memory_space<vmem>>, vector<1x256xf32>
    %6 = vector.broadcast %5 : vector<1x256xf32> to vector<8x256xf32>
    %7 = arith.addf %4, %6 : vector<8x256xf32>
    %c0_7 = arith.constant 0 : index
    %c0_8 = arith.constant 0 : index
    %8 = vector.load %arg4[%c0_7, %c0_8] : memref<1x256xf32, #tpu.memory_space<vmem>>, vector<1x256xf32>
    %c0_9 = arith.constant 0 : index
    %c0_10 = arith.constant 0 : index
    %9 = vector.load %arg5[%c0_9, %c0_10] : memref<1x256xf32, #tpu.memory_space<vmem>>, vector<1x256xf32>
    %10 = arith.addf %0, %7 : vector<8x256xf32>
    %cst_11 = arith.constant dense<0.000000e+00> : vector<8xf32>
    %11 = vector.multi_reduction <add>, %10, %cst_11 [1] : vector<8x256xf32> to vector<8xf32>
    %12 = vector.shape_cast %11 : vector<8xf32> to vector<8x1xf32>
    %cst_12 = arith.constant 2.560000e+02 : f32
    %13 = vector.broadcast %cst_12 : f32 to vector<8x1xf32>
    %14 = arith.divf %12, %13 : vector<8x1xf32>
    %15 = arith.mulf %10, %10 : vector<8x256xf32>
    %cst_13 = arith.constant dense<0.000000e+00> : vector<8xf32>
    %16 = vector.multi_reduction <add>, %15, %cst_13 [1] : vector<8x256xf32> to vector<8xf32>
    %17 = vector.shape_cast %16 : vector<8xf32> to vector<8x1xf32>
    %cst_14 = arith.constant 2.560000e+02 : f32
    %18 = vector.broadcast %cst_14 : f32 to vector<8x1xf32>
    %19 = arith.divf %17, %18 : vector<8x1xf32>
    %20 = arith.mulf %14, %14 : vector<8x1xf32>
    %21 = arith.subf %19, %20 : vector<8x1xf32>
    %22 = vector.broadcast %14 : vector<8x1xf32> to vector<8x256xf32>
    %23 = arith.subf %10, %22 : vector<8x256xf32>
    %cst_15 = arith.constant 9.99999974E-6 : f32
    %24 = vector.broadcast %cst_15 : f32 to vector<8x1xf32>
    %25 = arith.addf %21, %24 : vector<8x1xf32>
    %26 = math.rsqrt %25 : vector<8x1xf32>
    %27 = vector.broadcast %26 : vector<8x1xf32> to vector<8x256xf32>
    %28 = arith.mulf %23, %27 : vector<8x256xf32>
    %29 = vector.broadcast %8 : vector<1x256xf32> to vector<8x256xf32>
    %30 = arith.mulf %28, %29 : vector<8x256xf32>
    %31 = vector.broadcast %9 : vector<1x256xf32> to vector<8x256xf32>
    %32 = arith.addf %30, %31 : vector<8x256xf32>
    %33 = arith.addf %0, %32 : vector<8x256xf32>
    %cst_16 = arith.constant dense<0.000000e+00> : vector<8xf32>
    %34 = vector.multi_reduction <add>, %33, %cst_16 [1] : vector<8x256xf32> to vector<8xf32>
    %35 = vector.shape_cast %34 : vector<8xf32> to vector<8x1xf32>
    %cst_17 = arith.constant 2.560000e+02 : f32
    %36 = vector.broadcast %cst_17 : f32 to vector<8x1xf32>
    %37 = arith.divf %35, %36 : vector<8x1xf32>
    %38 = arith.mulf %33, %33 : vector<8x256xf32>
    %cst_18 = arith.constant dense<0.000000e+00> : vector<8xf32>
    %39 = vector.multi_reduction <add>, %38, %cst_18 [1] : vector<8x256xf32> to vector<8xf32>
    %40 = vector.shape_cast %39 : vector<8xf32> to vector<8x1xf32>
    %cst_19 = arith.constant 2.560000e+02 : f32
    %41 = vector.broadcast %cst_19 : f32 to vector<8x1xf32>
    %42 = arith.divf %40, %41 : vector<8x1xf32>
    %43 = arith.mulf %37, %37 : vector<8x1xf32>
    %44 = arith.subf %42, %43 : vector<8x1xf32>
    %45 = vector.broadcast %37 : vector<8x1xf32> to vector<8x256xf32>
    %46 = arith.subf %33, %45 : vector<8x256xf32>
    %cst_20 = arith.constant 9.99999974E-6 : f32
    %47 = vector.broadcast %cst_20 : f32 to vector<8x1xf32>
    %48 = arith.addf %44, %47 : vector<8x1xf32>
    %49 = math.rsqrt %48 : vector<8x1xf32>
    %50 = vector.broadcast %49 : vector<8x1xf32> to vector<8x256xf32>
    %51 = arith.mulf %46, %50 : vector<8x256xf32>
    %52 = vector.broadcast %8 : vector<1x256xf32> to vector<8x256xf32>
    %53 = arith.mulf %51, %52 : vector<8x256xf32>
    %54 = vector.broadcast %9 : vector<1x256xf32> to vector<8x256xf32>
    %55 = arith.addf %53, %54 : vector<8x256xf32>
    %56 = arith.truncf %55 : vector<8x256xf32> to vector<8x256xbf16>
    %c0_21 = arith.constant 0 : index
    %c0_22 = arith.constant 0 : index
    %57 = vector.load %arg6[%c0_21, %c0_22] : memref<256x1024xbf16, #tpu.memory_space<vmem>>, vector<256x1024xbf16>
    %cst_23 = arith.constant dense<0.000000e+00> : vector<8x1024xf32>
    %58 = tpu.matmul %56, %57, %cst_23 {dimension_numbers = #tpu.dot_dimension_numbers<[1], [0], [0], [1], [0, 0, 1, 1], [], []>} : vector<8x256xbf16>, vector<256x1024xbf16>, vector<8x1024xf32> -> vector<8x1024xf32>
    %c0_24 = arith.constant 0 : index
    %c0_25 = arith.constant 0 : index
    %59 = vector.load %arg7[%c0_24, %c0_25] : memref<1x1024xf32, #tpu.memory_space<vmem>>, vector<1x1024xf32>
    %60 = vector.broadcast %59 : vector<1x1024xf32> to vector<8x1024xf32>
    %61 = arith.addf %58, %60 : vector<8x1024xf32>
    %cst_26 = arith.constant 5.000000e-01 : f32
    %62 = vector.broadcast %cst_26 : f32 to vector<8x1024xf32>
    %63 = arith.mulf %62, %61 : vector<8x1024xf32>
    %cst_27 = arith.constant 0.707106769 : f32
    %64 = vector.broadcast %cst_27 : f32 to vector<8x1024xf32>
    %65 = arith.mulf %61, %64 : vector<8x1024xf32>
    %66 = math.erf %65 : vector<8x1024xf32>
    %cst_28 = arith.constant 1.000000e+00 : f32
    %67 = vector.broadcast %cst_28 : f32 to vector<8x1024xf32>
    %68 = arith.addf %67, %66 : vector<8x1024xf32>
    %69 = arith.mulf %63, %68 : vector<8x1024xf32>
    %70 = arith.truncf %69 : vector<8x1024xf32> to vector<8x1024xbf16>
    %c0_29 = arith.constant 0 : index
    %c0_30 = arith.constant 0 : index
    %71 = vector.load %arg8[%c0_29, %c0_30] : memref<1024x256xbf16, #tpu.memory_space<vmem>>, vector<1024x256xbf16>
    %cst_31 = arith.constant dense<0.000000e+00> : vector<8x256xf32>
    %72 = tpu.matmul %70, %71, %cst_31 {dimension_numbers = #tpu.dot_dimension_numbers<[1], [0], [0], [1], [0, 0, 1, 1], [], []>} : vector<8x1024xbf16>, vector<1024x256xbf16>, vector<8x256xf32> -> vector<8x256xf32>
    %c0_32 = arith.constant 0 : index
    %c0_33 = arith.constant 0 : index
    %73 = vector.load %arg9[%c0_32, %c0_33] : memref<1x256xf32, #tpu.memory_space<vmem>>, vector<1x256xf32>
    %74 = vector.broadcast %73 : vector<1x256xf32> to vector<8x256xf32>
    %75 = arith.addf %72, %74 : vector<8x256xf32>
    %cst_34 = arith.constant 5.000000e-01 : f32
    %76 = vector.broadcast %cst_34 : f32 to vector<8x256xf32>
    %77 = arith.mulf %76, %75 : vector<8x256xf32>
    %78 = arith.addf %55, %77 : vector<8x256xf32>
    %c0_35 = arith.constant 0 : index
    %c0_36 = arith.constant 0 : index
    %79 = vector.load %arg10[%c0_35, %c0_36] : memref<8x256xf32, #tpu.memory_space<vmem>>, vector<8x256xf32>
    tpu.vector_store %arg10[%c0_35, %c0_36], %78 {strides = array<i32>} : memref<8x256xf32, #tpu.memory_space<vmem>>, vector<8x256xf32>,
    return
  }
}

</mosaic_0001>

<bundles_post_ra>
// kernel: tpu_custom_call.1
= control target key start
LH: loop header
LB: loop body
LE: loop exit
PB: predicated region body
PF: predicated region fallthrough
CT: control target
= control target key end

     0   :  { %15 = vsyncpa [#allocation3], 0  ;;  %s3403_s0 = inlined_call_operand.hbm [shape: f32[8,256], index: 0, kind: input, shape index: {}]   ;;  %s3404_s1 = inlined_call_operand.hbm [shape: f32[8,256], index: 1, kind: input, shape index: {}]   ;;  %s3405_s2 = inlined_call_operand.hbm [shape: bf16[256,256], index: 2, kind: input, shape index: {}]   ;;  %s3406_s3 = inlined_call_operand.vmem [shape: f32[1,256], index: 3, kind: input, shape index: {}]   ;;  %s3407_s4 = inlined_call_operand.vmem [shape: f32[1,256], index: 4, kind: input, shape index: {}]   ;;  %s3408_s5 = inlined_call_operand.vmem [shape: f32[1,256], index: 5, kind: input, shape index: {}]   ;;  %s3409_s6 = inlined_call_operand.hbm [shape: bf16[256,1024], index: 6, kind: input, shape index: {}]   ;;  %s3410_s7 = inlined_call_operand.vmem [shape: f32[1,1024], index: 7, kind: input, shape index: {}]   ;;  %s3411_s8 = inlined_call_operand.hbm [shape: bf16[1024,256], index: 8, kind: input, shape index: {}]   ;;  %s3412_s9 = inlined_call_operand.vmem [shape: f32[1,256], index: 9, kind: input, shape index: {}]   ;;  %s3413_s10 = inlined_call_operand.hbm [shape: f32[8,256], index: 10, kind: output, shape index: {}]  }
   0x1   :  { %16 = vsyncpa [#allocation6], 0 }
   0x2   :  { %17 = vsyncpa [#allocation9], 0 }
   0x3   :  { %18 = vsyncpa [#allocation4], 0  ;;  %s3127_s13 = smov [#allocation5]   ;;  %s3128_s15 = smov [#allocation8]  }
   0x4   :  { %s35_s14 = sshll.u32 %s3127_s13, 4  ;;  %s62_s16 = sshll.u32 %s3128_s15, 4  ;;  %s36_s14 = int_to_ptr.vmem [resolvable:$true] %s35_s14  ;;  %s3192_s16 = int_to_ptr.vmem [resolvable:$true] %s62_s16 }
   0x5   :  { %s2987_s19 = scalar_lea.hbm %s3404_s1, 256 }
   0x6   :  { %p2988_p0 = scmp.ne.s32.totalorder %s3404_s1, %s2987_s19  ;;  %p2991_p1 = scmp.lt.u32.totalorder %s2987_s19, %s3404_s1 }
   0x8   :  { %p2993_p2 = pnand %p2991_p1, %p2988_p0 }
   0xa   :  { %2996 = shalt.err (!%p2993_p2)
}
   0xb   :  { %s2997_s24 = scalar_lea.vmem %s36_s14, 256  ;;  %p3002_p4 = scmp.lt.s32.totalorder %s36_s14, %s36_s14 }
   0xc   :  { %p2998_p3 = scmp.ne.s32.totalorder %s36_s14, %s2997_s24  ;;  %p3003_p5 = scmp.lt.s32.totalorder %s2997_s24, %s2997_s24 }
   0xe   :  { %p3004_p6 = por %p3003_p5, %p3002_p4 }
  0x10   :  { %p3005_p7 = pnand %p3004_p6, %p2998_p3 }
  0x12   :  { %3008 = shalt.err (!%p3005_p7)
}
  0x13   :  { %38 = dma.hbm_to_vmem [thread:$0]  %s3404_s1, 256, %s36_s14, [#allocation6]  }
  0x14   :  { %s3009_s29 = scalar_lea.hbm %s3409_s6, 16384 }
  0x15   :  { %p3010_p8 = scmp.ne.s32.totalorder %s3409_s6, %s3009_s29  ;;  %p3013_p9 = scmp.lt.u32.totalorder %s3009_s29, %s3409_s6 }
  0x17   :  { %p3015_p10 = pnand %p3013_p9, %p3010_p8 }
  0x19   :  { %3018 = shalt.err (!%p3015_p10)
}
  0x1a   :  { %s3019_s15 = scalar_lea.vmem %s3192_s16, 16384  ;;  %p3024_p12 = scmp.lt.s32.totalorder %s3192_s16, %s3192_s16 }
  0x1b   :  { %p3020_p11 = scmp.ne.s32.totalorder %s3192_s16, %s3019_s15  ;;  %p3025_p13 = scmp.lt.s32.totalorder %s3019_s15, %s3019_s15 }
  0x1d   :  { %p3026_p0 = por %p3025_p13, %p3024_p12 }
  0x1f   :  { %p3027_p1 = pnand %p3026_p0, %p3020_p11 }
  0x21   :  { %3030 = shalt.err (!%p3027_p1)
}
  0x22   :  { %s3129_s1 = smov 512   ;;  %s3130_s14 = smov 32  }
  0x23   :  { %68 = dma.hbm_to_vmem [thread:$0]  %s3409_s6, 16384, %s3192_s16, [#allocation9], %s3129_s1, %s3129_s1, %s3130_s14  }
  0x24   :  { %s3131_s19 = smov [#allocation2]   ;;  %s3132_s21 = smov [#allocation7]  }
  0x25   :  { %s25_s20 = sshll.u32 %s3131_s19, 4  ;;  %s44_s22 = sshll.u32 %s3132_s21, 4  ;;  %s26_s20 = int_to_ptr.vmem [resolvable:$true] %s25_s20  ;;  %s3223_s22 = int_to_ptr.vmem [resolvable:$true] %s44_s22 }
  0x26   :  { %s3031_s25 = scalar_lea.hbm %s3403_s0, 256 }
  0x27   :  { %p3032_p2 = scmp.ne.s32.totalorder %s3403_s0, %s3031_s25  ;;  %p3035_p3 = scmp.lt.u32.totalorder %s3031_s25, %s3403_s0 }
  0x29   :  { %p3037_p4 = pnand %p3035_p3, %p3032_p2 }
  0x2b   :  { %3040 = shalt.err (!%p3037_p4)
}
  0x2c   :  { %s3041_s6 = scalar_lea.vmem %s26_s20, 256  ;;  %p3046_p6 = scmp.lt.s32.totalorder %s26_s20, %s26_s20 }
  0x2d   :  { %p3042_p5 = scmp.ne.s32.totalorder %s26_s20, %s3041_s6  ;;  %p3047_p7 = scmp.lt.s32.totalorder %s3041_s6, %s3041_s6 }
  0x2f   :  { %p3048_p8 = por %p3047_p7, %p3046_p6 }
  0x31   :  { %p3049_p9 = pnand %p3048_p8, %p3042_p5 }
  0x33   :  { %3052 = shalt.err (!%p3049_p9)
}
  0x34   :  { %28 = dma.hbm_to_vmem [thread:$0]  %s3403_s0, 256, %s26_s20, [#allocation3]  }
  0x35   :  { %s3053_s13 = scalar_lea.hbm %s3405_s2, 4096 }
  0x36   :  { %p3054_p10 = scmp.ne.s32.totalorder %s3405_s2, %s3053_s13  ;;  %p3057_p11 = scmp.lt.u32.totalorder %s3053_s13, %s3405_s2 }
  0x38   :  { %p3059_p12 = pnand %p3057_p11, %p3054_p10 }
  0x3a   :  { %3062 = shalt.err (!%p3059_p12)
}
  0x3b   :  { %s3063_s18 = scalar_lea.vmem %s3223_s22, 4096  ;;  %p3068_p0 = scmp.lt.s32.totalorder %s3223_s22, %s3223_s22 }
  0x3c   :  { %p3064_p13 = scmp.ne.s32.totalorder %s3223_s22, %s3063_s18  ;;  %p3069_p1 = scmp.lt.s32.totalorder %s3063_s18, %s3063_s18 }
  0x3e   :  { %p3070_p2 = por %p3069_p1, %p3068_p0 }
  0x40   :  { %p3071_p3 = pnand %p3070_p2, %p3064_p13 }
  0x42   :  { %3074 = shalt.err (!%p3071_p3)
}
  0x43   :  { %s3133_s0 = smov 128   ;;  %s3134_s19 = smov 8  }
  0x44   :  { %50 = dma.hbm_to_vmem [thread:$0]  %s3405_s2, 4096, %s3223_s22, [#allocation6], %s3133_s0, %s3133_s0, %s3134_s19  }
  0x45   :  { %s3135_s23 = smov [#allocation10]   ;;  %s3075_s27 = scalar_lea.hbm %s3411_s8, 16384 }
  0x46   :  { %s76_s24 = sshll.u32 %s3135_s23, 4  ;;  %p3076_p4 = scmp.ne.s32.totalorder %s3411_s8, %s3075_s27  ;;  %s77_s24 = int_to_ptr.vmem [resolvable:$true] %s76_s24 }
  0x47   :  { %p3079_p5 = scmp.lt.u32.totalorder %s3075_s27, %s3411_s8 }
  0x49   :  { %p3081_p6 = pnand %p3079_p5, %p3076_p4 }
  0x4b   :  { %3084 = shalt.err (!%p3081_p6)
}
  0x4c   :  { %s3085_s30 = scalar_lea.vmem %s77_s24, 16384  ;;  %p3090_p8 = scmp.lt.s32.totalorder %s77_s24, %s77_s24 }
  0x4d   :  { %p3086_p7 = scmp.ne.s32.totalorder %s77_s24, %s3085_s30  ;;  %p3091_p9 = scmp.lt.s32.totalorder %s3085_s30, %s3085_s30 }
  0x4f   :  { %p3092_p10 = por %p3091_p9, %p3090_p8 }
  0x51   :  { %p3093_p11 = pnand %p3092_p10, %p3086_p7 }
  0x53   :  { %3096 = shalt.err (!%p3093_p11)
}
  0x54   :  { %82 = dma.hbm_to_vmem [thread:$0]  %s3411_s8, 16384, %s77_s24, [#allocation9], %s3133_s0, %s3133_s0, %s3134_s19  }
  0x55   :  { %3119 = dma.done.wait [#allocation3], 256  }
  0x56   :  { %3120 = vsyncadd [#allocation3], 4294967040 }
  0x57   :  { %3121 = dma.done.wait [#allocation6], 4352  }
  0x58   :  { %3122 = vsyncadd [#allocation6], 4294962944 }
  0x59   :  { %3123 = dma.done.wait [#allocation9], 32768  }
  0x5a   :  { %3124 = vsyncadd [#allocation9], 4294934528  ;;  %v2727_v0 = vld [vmem:[#allocation7 + $0x4] ss:$8 sps:$4 sm:$0xff]   ;;  %v2729_v1 = vld [vmem:[#allocation7] ss:$8 sps:$4 sm:$0xff]   ;;  %v140_v36 = vlaneseq }
  0x5b   :  { %310 = vmatprep.subr.bf16.mxu0 %v2727_v0  ;;  %v2730_v2 = vld [vmem:[#allocation7 + $0x14] ss:$8 sps:$4 sm:$0xff]   ;;  %v2732_v3 = vld [vmem:[#allocation7 + $0x10] ss:$8 sps:$4 sm:$0xff]   ;;  %v2733_v4 = vld [vmem:[#allocation7 + $0x24] ss:$8 sps:$4 sm:$0xff]  }
  0x5c   :  { %311 = vmatpush1.bf16.msra.mxu0 %v2729_v1  ;;  %v2735_v5 = vld [vmem:[#allocation7 + $0x20] ss:$8 sps:$4 sm:$0xff]   ;;  %v2736_v6 = vld [vmem:[#allocation7 + $0x34] ss:$8 sps:$4 sm:$0xff]   ;;  %v2738_v7 = vld [vmem:[#allocation7 + $0x30] ss:$8 sps:$4 sm:$0xff]  }
  0x5d   :  { %312 = vmatprep.subr.bf16.mxu0 %v2730_v2  ;;  %v2739_v8 = vld [vmem:[#allocation7 + $0x44] ss:$8 sps:$4 sm:$0xff]   ;;  %v2741_v9 = vld [vmem:[#allocation7 + $0x40] ss:$8 sps:$4 sm:$0xff]   ;;  %v2742_v10 = vld [vmem:[#allocation7 + $0x54] ss:$8 sps:$4 sm:$0xff]  }
  0x5e   :  { %v2744_v11 = vld [vmem:[#allocation7 + $0x50] ss:$8 sps:$4 sm:$0xff]   ;;  %v2745_v12 = vld [vmem:[#allocation7 + $0x64] ss:$8 sps:$4 sm:$0xff]   ;;  %v2747_v14 = vld [vmem:[#allocation7 + $0x60] ss:$8 sps:$4 sm:$0xff]  }
  0x5f   :  { %v103_v13 = vld [vmem:[#allocation5 + $0x8] sm:$0xff]  ;;  %v2751_v18 = vld [vmem:[#allocation7 + $0x84] ss:$8 sps:$4 sm:$0xff]   ;;  %v2753_v19 = vld [vmem:[#allocation7 + $0x80] ss:$8 sps:$4 sm:$0xff]   ;;  %v3266_v37 = vshrl.u32 %v140_v36, 7 }
  0x60   :  { %313 = vmatpush1.bf16.msra.mxu0 %v2732_v3  ;;  %v2748_v15 = vld [vmem:[#allocation7 + $0x74] ss:$8 sps:$4 sm:$0xff]   ;;  %v105_v16 = vpack.c.bf16 %v103_v13, %v103_v13  ;;  %v2750_v17 = vld [vmem:[#allocation7 + $0x70] ss:$8 sps:$4 sm:$0xff]   ;;  %v2757_v22 = vld [vmem:[#allocation7 + $0xa4] ss:$8 sps:$4 sm:$0xff]  }
  0x61   :  { %314 = vmatprep.subr.bf16.mxu0 %v2733_v4  ;;  %v2754_v20 = vld [vmem:[#allocation7 + $0x94] ss:$8 sps:$4 sm:$0xff]   ;;  %v2756_v21 = vld [vmem:[#allocation7 + $0x90] ss:$8 sps:$4 sm:$0xff]   ;;  %v2759_v23 = vld [vmem:[#allocation7 + $0xa0] ss:$8 sps:$4 sm:$0xff]  }
  0x62   :  { %342 = vmatprep.mubr.bf16.mxu0 %v105_v16  ;;  %v2760_v24 = vld [vmem:[#allocation7 + $0xb4] ss:$8 sps:$4 sm:$0xff]   ;;  %v2762_v25 = vld [vmem:[#allocation7 + $0xb0] ss:$8 sps:$4 sm:$0xff]   ;;  %v2763_v26 = vld [vmem:[#allocation7 + $0xc4] ss:$8 sps:$4 sm:$0xff]  }
  0x63   :  { %v2765_v27 = vld [vmem:[#allocation7 + $0xc0] ss:$8 sps:$4 sm:$0xff]   ;;  %v2766_v28 = vld [vmem:[#allocation7 + $0xd4] ss:$8 sps:$4 sm:$0xff]   ;;  %v2768_v29 = vld [vmem:[#allocation7 + $0xd0] ss:$8 sps:$4 sm:$0xff]  }
  0x64   :  { %315 = vmatpush1.bf16.msra.mxu0 %v2735_v5  ;;  %v2769_v30 = vld [vmem:[#allocation7 + $0xe4] ss:$8 sps:$4 sm:$0xff]   ;;  %v2771_v31 = vld [vmem:[#allocation7 + $0xe0] ss:$8 sps:$4 sm:$0xff]   ;;  %v2772_v32 = vld [vmem:[#allocation7 + $0xf4] ss:$8 sps:$4 sm:$0xff]  }
  0x65   :  { %316 = vmatprep.subr.bf16.mxu0 %v2736_v6  ;;  %v2774_v33 = vld [vmem:[#allocation7 + $0xf0] ss:$8 sps:$4 sm:$0xff]   ;;  %v3269_v38 = vsub.s32 0, %v3266_v37  ;;  %v138_v39 = vld [vmem:[%s3406_s3] sm:$0x3]  ;;  %v3275_v40 = vsub.s32 1, %v3266_v37 }
  0x66   :  { %v102_v34 = vld [vmem:[#allocation5] sm:$0xff]  ;;  %v3279_v43 = vld [vmem:[#allocation2] sm:$0xff]  ;;  %v3281_v46 = vld [vmem:[#allocation2 + $0x8] sm:$0xff]  ;;  %s3136_s14 = smov [#allocation11]  }
  0x67   :  { %v104_v35 = vpack.c.bf16 %v102_v34, %v102_v34  ;;  %v143_v41 = vrot.slane %v138_v39, %v3269_v38  ;;  %v147_v42 = vrot.slane %v138_v39, %v3275_v40  ;;  %v426_v57 = vld [vmem:[#allocation8] sm:$0xff]  ;;  %v428_v59 = vld [vmem:[#allocation8 + $0x10] sm:$0xff]  ;;  %s2404_s17 = sshll.u32 %s3136_s14, 4  ;;  %s2405_s17 = int_to_ptr.vmem [resolvable:$true] %s2404_s17 }
  0x68   :  { %317 = vmatpush1.bf16.msra.mxu0 %v2738_v7  ;;  %v430_v58 = vld [vmem:[#allocation8 + $0x20] sm:$0xff]  ;;  %v432_v62 = vld [vmem:[#allocation8 + $0x30] sm:$0xff]  ;;  %p3102_p13 = scmp.lt.s32.totalorder %s2405_s17, %s2405_s17 }
  0x69   :  { %318 = vmatprep.subr.bf16.mxu0 %v2739_v8  ;;  %v2447_v60 = vcombine.low %v426_v57, %v430_v58  ;;  %v2448_v61 = vcombine.high %v426_v57, %v430_v58  ;;  %v434_v63 = vld [vmem:[#allocation8 + $0x40] sm:$0xff]  ;;  %v2452_v1 = vcombine.high %v428_v59, %v432_v62  ;;  %v2451_v2 = vcombine.low %v428_v59, %v432_v62  ;;  %v436_v4 = vld [vmem:[#allocation8 + $0x50] sm:$0xff] }
  0x6a   :  { %v438_v0 = vld [vmem:[#allocation8 + $0x60] sm:$0xff]  ;;  %v440_v5 = vld [vmem:[#allocation8 + $0x70] sm:$0xff] }
  0x6b   :  { %v2456_v3 = vcombine.high %v434_v63, %v438_v0  ;;  %v442_v6 = vld [vmem:[#allocation8 + $0x80] sm:$0xff]  ;;  %v2460_v7 = vcombine.high %v436_v4, %v440_v5  ;;  %1318 = vmatprep.subr.bf16.mxu1 %v2452_v1  ;;  %v472_v34 = vld [vmem:[#allocation8 + $0x170] sm:$0xff] }
  0x6c   :  { %319 = vmatpush1.bf16.msra.mxu0 %v2741_v9  ;;  %v446_v8 = vld [vmem:[#allocation8 + $0xa0] sm:$0xff]  ;;  %v444_v9 = vld [vmem:[#allocation8 + $0x90] sm:$0xff]  ;;  %1319 = vmatpush1.bf16.msra.mxu1 %v2451_v2 }
  0x6d   :  { %320 = vmatprep.subr.bf16.mxu0 %v2742_v10  ;;  %v448_v10 = vld [vmem:[#allocation8 + $0xb0] sm:$0xff]  ;;  %v2464_v13 = vcombine.high %v442_v6, %v446_v8  ;;  %1320 = vmatprep.subr.bf16.mxu1 %v2460_v7  ;;  %v454_v16 = vld [vmem:[#allocation8 + $0xe0] sm:$0xff] }
  0x6e   :  { %v488_v57 = vld [vmem:[#allocation8 + $0x1f0] sm:$0xff]  ;;  %v490_v62 = vld [vmem:[#allocation8 + $0x200] sm:$0xff] }
  0x6f   :  { %v496_v1 = vld [vmem:[#allocation8 + $0x230] sm:$0xff] }
  0x70   :  { %321 = vmatpush1.bf16.msra.mxu0 %v2744_v11  ;;  %v2455_v11 = vcombine.low %v434_v63, %v438_v0  ;;  %v494_v63 = vld [vmem:[#allocation8 + $0x220] sm:$0xff]  ;;  %v492_v0 = vld [vmem:[#allocation8 + $0x210] sm:$0xff] }
  0x71   :  { %322 = vmatprep.subr.bf16.mxu0 %v2745_v12  ;;  %v2459_v12 = vcombine.low %v436_v4, %v440_v5  ;;  %v2512_v4 = vcombine.high %v490_v62, %v494_v63  ;;  %v2516_v5 = vcombine.high %v492_v0, %v496_v1  ;;  %v2515_v7 = vcombine.low %v492_v0, %v496_v1  ;;  %v526_v0 = vld [vmem:[#allocation8 + $0x320] sm:$0xff]  ;;  %v524_v1 = vld [vmem:[#allocation8 + $0x310] sm:$0xff] }
  0x73   :  { %1321 = vmatpush1.bf16.msra.mxu1 %v2459_v12 }
  0x74   :  { %323 = vmatpush1.bf16.msra.mxu0 %v2747_v14  ;;  %v2468_v14 = vcombine.high %v444_v9, %v448_v10 }
  0x75   :  { %324 = vmatprep.subr.bf16.mxu0 %v2748_v15  ;;  %v450_v15 = vld [vmem:[#allocation8 + $0xc0] sm:$0xff] }
  0x76   :  { %1322 = vmatprep.subr.bf16.mxu1 %v2468_v14 }
  0x78   :  { %325 = vmatpush1.bf16.msra.mxu0 %v2750_v17  ;;  %v452_v17 = vld [vmem:[#allocation8 + $0xd0] sm:$0xff] }
  0x79   :  { %326 = vmatprep.subr.bf16.mxu0 %v2751_v18  ;;  %v456_v18 = vld [vmem:[#allocation8 + $0xf0] sm:$0xff] }
  0x7c   :  { %327 = vmatpush1.bf16.msra.mxu0 %v2753_v19  ;;  %v2463_v19 = vcombine.low %v442_v6, %v446_v8  ;;  %v2511_v6 = vcombine.low %v490_v62, %v494_v63  ;;  %v522_v63 = vld [vmem:[#allocation8 + $0x300] sm:$0xff] }
  0x7d   :  { %328 = vmatprep.subr.bf16.mxu0 %v2754_v20  ;;  %v2467_v20 = vcombine.low %v444_v9, %v448_v10 }
  0x7f   :  { %1323 = vmatpush1.bf16.msra.mxu1 %v2467_v20 }
  0x80   :  { %329 = vmatpush1.bf16.msra.mxu0 %v2756_v21  ;;  %v2472_v21 = vcombine.high %v450_v15, %v454_v16 }
  0x81   :  { %330 = vmatprep.subr.bf16.mxu0 %v2757_v22  ;;  %v2476_v22 = vcombine.high %v452_v17, %v456_v18 }
  0x83   :  { %1324 = vmatprep.subr.bf16.mxu1 %v2476_v22 }
  0x84   :  { %331 = vmatpush1.bf16.msra.mxu0 %v2759_v23  ;;  %v458_v23 = vld [vmem:[#allocation8 + $0x100] sm:$0xff] }
  0x85   :  { %332 = vmatprep.subr.bf16.mxu0 %v2760_v24  ;;  %v462_v24 = vld [vmem:[#allocation8 + $0x120] sm:$0xff] }
  0x88   :  { %333 = vmatpush1.bf16.msra.mxu0 %v2762_v25  ;;  %v460_v25 = vld [vmem:[#allocation8 + $0x110] sm:$0xff] }
  0x89   :  { %334 = vmatprep.subr.bf16.mxu0 %v2763_v26  ;;  %v464_v26 = vld [vmem:[#allocation8 + $0x130] sm:$0xff] }
  0x8a   :  { %v2483_v36 = vcombine.low %v460_v25, %v464_v26 }
  0x8c   :  { %335 = vmatpush1.bf16.msra.mxu0 %v2765_v27  ;;  %v2471_v27 = vcombine.low %v450_v15, %v454_v16  ;;  %v351_v15 = vld [vmem:[%s3407_s4] sm:$0x3] }
  0x8d   :  { %336 = vmatprep.subr.bf16.mxu0 %v2766_v28  ;;  %v2475_v28 = vcombine.low %v452_v17, %v456_v18  ;;  %v352_v16 = vld [vmem:[%s3408_s5] sm:$0x3]  ;;  %v3307_v20 = vrot.slane %v351_v15, %v3275_v40 }
  0x8f   :  { %1325 = vmatpush1.bf16.msra.mxu1 %v2475_v28 }
  0x90   :  { %337 = vmatpush1.bf16.msra.mxu0 %v2768_v29  ;;  %v2480_v29 = vcombine.high %v458_v23, %v462_v24 }
  0x91   :  { %338 = vmatprep.subr.bf16.mxu0 %v2769_v30  ;;  %v2484_v30 = vcombine.high %v460_v25, %v464_v26  ;;  %v3313_v25 = vrot.slane %v352_v16, %v3275_v40 }
  0x93   :  { %1326 = vmatprep.subr.bf16.mxu1 %v2484_v30 }
  0x94   :  { %339 = vmatpush1.bf16.msra.mxu0 %v2771_v31  ;;  %v466_v31 = vld [vmem:[#allocation8 + $0x140] sm:$0xff]  ;;  %1327 = vmatpush1.bf16.msra.mxu1 %v2483_v36 }
  0x95   :  { %340 = vmatprep.subr.bf16.mxu0 %v2772_v32  ;;  %v470_v32 = vld [vmem:[#allocation8 + $0x160] sm:$0xff] }
  0x96   :  { %v2488_v39 = vcombine.high %v466_v31, %v470_v32 }
  0x98   :  { %341 = vmatpush1.bf16.msra.mxu0 %v2774_v33  ;;  %v468_v33 = vld [vmem:[#allocation8 + $0x150] sm:$0xff] }
  0x99   :  { %1236 = vmatprep.subr.bf16.mxu0 %v2448_v61 }
  0x9b   :  { %343 = vmatmul.mubr.bf16.vlgmr.msra.gmra.mrb[0].mxu0 %v104_v35  ;;  %v2479_v35 = vcombine.low %v458_v23, %v462_v24  ;;  %v3310_v24 = vrot.slane %v352_v16, %v3269_v38  ;;  %v544_v16 = vld [vmem:[#allocation8 + $0x3b0] sm:$0xff] }
  0x9c   :  { %1237 = vmatpush1.bf16.msra.mxu0 %v2447_v60 }
  0x9d   :  { %1238 = vmatprep.subr.bf16.mxu0 %v2456_v3 }
  0xa0   :  { %1239 = vmatpush1.bf16.msra.mxu0 %v2455_v11 }
  0xa1   :  { %1240 = vmatprep.subr.bf16.mxu0 %v2464_v13 }
  0xa4   :  { %1241 = vmatpush1.bf16.msra.mxu0 %v2463_v19  ;;  %v3304_v19 = vrot.slane %v351_v15, %v3269_v38  ;;  %v540_v15 = vld [vmem:[#allocation8 + $0x390] sm:$0xff] }
  0xa5   :  { %1242 = vmatprep.subr.bf16.mxu0 %v2472_v21 }
  0xa8   :  { %1243 = vmatpush1.bf16.msra.mxu0 %v2471_v27 }
  0xa9   :  { %1244 = vmatprep.subr.bf16.mxu0 %v2480_v29 }
  0xac   :  { %1245 = vmatpush1.bf16.msra.mxu0 %v2479_v35  ;;  %v502_v35 = vld [vmem:[#allocation8 + $0x260] sm:$0xff] }
  0xad   :  { %1246 = vmatprep.subr.bf16.mxu0 %v2488_v39  ;;  %v504_v39 = vld [vmem:[#allocation8 + $0x270] sm:$0xff] }
 0x16e   :  { %v344_v44 = vpop.f32.mrb[0].mxu0 }
 0x16f   :  { %v345_v45 = vadd.f32 %v344_v44, %v143_v41  ;;  %v346_v47 = vpop.f32.mrb[1].mxu0  ;;  %v2492_v41 = vcombine.high %v468_v33, %v472_v34  ;;  %v478_v44 = vld [vmem:[#allocation8 + $0x1a0] sm:$0xff] }
 0x170   :  { %v347_v48 = vadd.f32 %v346_v47, %v147_v42  ;;  %v348_v49 = vpop.f32.mrb[2].mxu0  ;;  %v474_v42 = vld [vmem:[#allocation8 + $0x180] sm:$0xff]  ;;  %v480_v47 = vld [vmem:[#allocation8 + $0x1b0] sm:$0xff] }
 0x171   :  { %v3284_v50 = vadd.f32 %v345_v45, %v3279_v43  ;;  %v349_v51 = vpop.f32.mrb[3].mxu0  ;;  %v476_v45 = vld [vmem:[#allocation8 + $0x190] sm:$0xff]  ;;  %v2491_v49 = vcombine.low %v468_v33, %v472_v34  ;;  %1328 = vmatprep.subr.bf16.mxu1 %v2492_v41  ;;  %v2495_v58 = vcombine.low %v474_v42, %v478_v44  ;;  %v498_v34 = vld [vmem:[#allocation8 + $0x240] sm:$0xff] }
 0x172   :  { %v3287_v52 = vadd.f32 %v347_v48, %v3281_v46  ;;  %v2487_v48 = vcombine.low %v466_v31, %v470_v32  ;;  %v2496_v51 = vcombine.high %v474_v42, %v478_v44  ;;  %v2499_v59 = vcombine.low %v476_v45, %v480_v47  ;;  %v506_v44 = vld [vmem:[#allocation8 + $0x280] sm:$0xff] }
 0x173   :  { %v360_v54 = vmul.f32 %v3284_v50, %v3284_v50  ;;  %1329 = vmatpush1.bf16.msra.mxu1 %v2491_v49  ;;  %v2520_v36 = vcombine.high %v498_v34, %v502_v35  ;;  %v2519_v41 = vcombine.low %v498_v34, %v502_v35  ;;  %v512_v49 = vld [vmem:[#allocation8 + $0x2b0] sm:$0xff]  ;;  %v427_v35 = vld [vmem:[#allocation8 + $0x8] sm:$0xff] }
 0x174   :  { %v355_v53 = vadd.f32 %v3287_v52, %v3284_v50  ;;  %v361_v55 = vmul.f32 %v3287_v52, %v3287_v52  ;;  %1247 = vmatpush1.bf16.msra.mxu0 %v2487_v48  ;;  %v508_v48 = vld [vmem:[#allocation8 + $0x290] sm:$0xff] }
 0x175   :  { %1248 = vmatprep.subr.bf16.mxu0 %v2496_v51 }
 0x176   :  { %356 = vadd.xlane.f32.xlu0 %v355_v53  ;;  %v362_v56 = vadd.f32 %v361_v55, %v360_v54  ;;  %v2500_v53 = vcombine.high %v476_v45, %v480_v47  ;;  %v482_v54 = vld [vmem:[#allocation8 + $0x1c0] sm:$0xff] }
 0x177   :  { %v486_v55 = vld [vmem:[#allocation8 + $0x1e0] sm:$0xff] }
 0x178   :  { %v2504_v60 = vcombine.high %v482_v54, %v486_v55  ;;  %1330 = vmatprep.subr.bf16.mxu1 %v2500_v53  ;;  %1249 = vmatpush1.bf16.msra.mxu0 %v2495_v58  ;;  %v2503_v2 = vcombine.low %v482_v54, %v486_v55  ;;  %v510_v45 = vld [vmem:[#allocation8 + $0x2a0] sm:$0xff]  ;;  %v2532_v53 = vcombine.high %v508_v48, %v512_v49  ;;  %v516_v58 = vld [vmem:[#allocation8 + $0x2d0] sm:$0xff] }
 0x179   :  { %1331 = vmatpush1.bf16.msra.mxu1 %v2499_v59  ;;  %v2528_v47 = vcombine.high %v506_v44, %v510_v45  ;;  %v2527_v51 = vcombine.low %v506_v44, %v510_v45  ;;  %v2531_v54 = vcombine.low %v508_v48, %v512_v49  ;;  %v514_v55 = vld [vmem:[#allocation8 + $0x2c0] sm:$0xff]  ;;  %v520_v59 = vld [vmem:[#allocation8 + $0x2f0] sm:$0xff] }
 0x17a   :  { %363 = vadd.xlane.f32.xlu0 %v362_v56  ;;  %v484_v56 = vld [vmem:[#allocation8 + $0x1d0] sm:$0xff]  ;;  %1250 = vmatprep.subr.bf16.mxu0 %v2504_v60  ;;  %v2539_v62 = vcombine.low %v516_v58, %v520_v59 }
 0x17b   :  { %v2508_v61 = vcombine.high %v484_v56, %v488_v57  ;;  %v2507_v3 = vcombine.low %v484_v56, %v488_v57  ;;  %v518_v56 = vld [vmem:[#allocation8 + $0x2e0] sm:$0xff] }
 0x17c   :  { %1251 = vmatpush1.bf16.msra.mxu0 %v2503_v2  ;;  %v2536_v57 = vcombine.high %v514_v55, %v518_v56  ;;  %v2535_v60 = vcombine.low %v514_v55, %v518_v56  ;;  %v2543_v2 = vcombine.low %v522_v63, %v526_v0 }
 0x17d   :  { %1332 = vmatprep.subr.bf16.mxu1 %v2508_v61  ;;  %1252 = vmatprep.subr.bf16.mxu0 %v2512_v4  ;;  %v2540_v61 = vcombine.high %v516_v58, %v520_v59  ;;  %v528_v4 = vld [vmem:[#allocation8 + $0x330] sm:$0xff] }
 0x17e   :  { %1333 = vmatpush1.bf16.msra.mxu1 %v2507_v3  ;;  %v2544_v3 = vcombine.high %v522_v63, %v526_v0  ;;  %v2780_v0 = vld [vmem:[#allocation10 + $0x14] ss:$8 sps:$4 sm:$0xff]  }
 0x17f   :  { %1334 = vmatprep.subr.bf16.mxu1 %v2516_v5  ;;  %v530_v5 = vld [vmem:[#allocation8 + $0x340] sm:$0xff] }
 0x180   :  { %1253 = vmatpush1.bf16.msra.mxu0 %v2511_v6  ;;  %v534_v6 = vld [vmem:[#allocation8 + $0x360] sm:$0xff] }
 0x181   :  { %1254 = vmatprep.subr.bf16.mxu0 %v2520_v36  ;;  %v431_v36 = vld [vmem:[#allocation8 + $0x28] sm:$0xff] }
 0x182   :  { %1335 = vmatpush1.bf16.msra.mxu1 %v2515_v7  ;;  %v2548_v7 = vcombine.high %v524_v1, %v528_v4 }
 0x184   :  { %1255 = vmatpush1.bf16.msra.mxu0 %v2519_v41 }
 0x185   :  { %1256 = vmatprep.subr.bf16.mxu0 %v2528_v47 }
 0x188   :  { %1257 = vmatpush1.bf16.msra.mxu0 %v2527_v51 }
 0x189   :  { %1258 = vmatprep.subr.bf16.mxu0 %v2536_v57 }
 0x18c   :  { %1259 = vmatpush1.bf16.msra.mxu0 %v2535_v60  ;;  %v435_v60 = vld [vmem:[#allocation8 + $0x48] sm:$0xff] }
 0x18d   :  { %1260 = vmatprep.subr.bf16.mxu0 %v2544_v3  ;;  %v455_v3 = vld [vmem:[#allocation8 + $0xe8] sm:$0xff] }
 0x190   :  { %1261 = vmatpush1.bf16.msra.mxu0 %v2543_v2  ;;  %v451_v2 = vld [vmem:[#allocation8 + $0xc8] sm:$0xff] }
 0x203   :  { %v357_v8 = vpop.xlane.xlu0 %356 }
 0x204   :  { %v359_v9 = vmul.f32 0.00390625, %v357_v8  ;;  %v2547_v8 = vcombine.low %v524_v1, %v528_v4  ;;  %v2778_v4 = vld [vmem:[#allocation10 + $0x10] ss:$8 sps:$4 sm:$0xff]  }
 0x206   :  { %v366_v11 = vmul.f32 %v359_v9, %v359_v9  ;;  %v368_v17 = vsub.f32 %v3284_v50, %v359_v9  ;;  %v369_v18 = vsub.f32 %v3287_v52, %v359_v9  ;;  %v2552_v9 = vcombine.high %v530_v5, %v534_v6 }
 0x207   :  { %v364_v10 = vpop.xlane.xlu0 %363 }
 0x208   :  { %v365_v12 = vmul.f32 0.00390625, %v364_v10  ;;  %v532_v10 = vld [vmem:[#allocation8 + $0x350] sm:$0xff]  ;;  %1262 = vmatprep.subr.bf16.mxu0 %v2552_v9  ;;  %v463_v9 = vld [vmem:[#allocation8 + $0x128] sm:$0xff] }
 0x20a   :  { %v367_v13 = vsub.f32 %v365_v12, %v366_v11  ;;  %v536_v11 = vld [vmem:[#allocation8 + $0x370] sm:$0xff]  ;;  %v538_v12 = vld [vmem:[#allocation8 + $0x380] sm:$0xff] }
 0x20c   :  { %v370_v14 = vadd.f32 1e-05, %v367_v13  ;;  %v2556_v13 = vcombine.high %v532_v10, %v536_v11 }
 0x20e   :  { %2967 = vrsqrt.f32 %v370_v14  ;;  %v542_v14 = vld [vmem:[#allocation8 + $0x3a0] sm:$0xff] }
 0x218   :  { %v2968_v21 = vpop.eup %2967 }
 0x219   :  { %v372_v22 = vmul.f32 %v2968_v21, %v368_v17  ;;  %v373_v23 = vmul.f32 %v2968_v21, %v369_v18  ;;  %v2551_v17 = vcombine.low %v530_v5, %v534_v6  ;;  %v2555_v18 = vcombine.low %v532_v10, %v536_v11  ;;  %v2783_v5 = vld [vmem:[#allocation10 + $0x24] ss:$8 sps:$4 sm:$0xff]   ;;  %v2781_v10 = vld [vmem:[#allocation10 + $0x20] ss:$8 sps:$4 sm:$0xff]   ;;  %v2786_v11 = vld [vmem:[#allocation10 + $0x34] ss:$8 sps:$4 sm:$0xff]  }
 0x21a   :  { %v2560_v21 = vcombine.high %v538_v12, %v542_v14 }
 0x21b   :  { %v385_v26 = vmul.f32 %v3304_v19, %v372_v22  ;;  %v386_v50 = vmul.f32 %v3307_v20, %v373_v23  ;;  %v2564_v22 = vcombine.high %v540_v15, %v544_v16  ;;  %v546_v23 = vld [vmem:[#allocation8 + $0x3c0] sm:$0xff]  ;;  %1263 = vmatpush1.bf16.msra.mxu0 %v2551_v17 }
 0x21c   :  { %1264 = vmatprep.subr.bf16.mxu0 %v2560_v21  ;;  %v2789_v17 = vld [vmem:[#allocation10 + $0x44] ss:$8 sps:$4 sm:$0xff]  }
 0x21d   :  { %v398_v52 = vadd.f32 %v3310_v24, %v385_v26  ;;  %v399_v27 = vadd.f32 %v3313_v25, %v386_v50  ;;  %v550_v26 = vld [vmem:[#allocation8 + $0x3e0] sm:$0xff]  ;;  %v548_v50 = vld [vmem:[#allocation8 + $0x3d0] sm:$0xff] }
 0x21f   :  { %v3320_v28 = vadd.f32 %v398_v52, %v3279_v43  ;;  %v3323_v29 = vadd.f32 %v399_v27, %v3281_v46  ;;  %v500_v43 = vld [vmem:[#allocation8 + $0x250] sm:$0xff]  ;;  %v2559_v27 = vcombine.low %v538_v12, %v542_v14  ;;  %v2473_v12 = vcombine.low %v451_v2, %v455_v3  ;;  %v467_v14 = vld [vmem:[#allocation8 + $0x148] sm:$0xff] }
 0x220   :  { %v2524_v46 = vcombine.high %v500_v43, %v504_v39  ;;  %v2523_v42 = vcombine.low %v500_v43, %v504_v39  ;;  %v552_v52 = vld [vmem:[#allocation8 + $0x3f0] sm:$0xff]  ;;  %v2450_v43 = vcombine.high %v427_v35, %v431_v36  ;;  %v2449_v39 = vcombine.low %v427_v35, %v431_v36  ;;  %v491_v36 = vld [vmem:[#allocation8 + $0x208] sm:$0xff] }
 0x221   :  { %v402_v30 = vadd.f32 %v3323_v29, %v3320_v28  ;;  %v406_v31 = vmul.f32 %v3320_v28, %v3320_v28  ;;  %v407_v32 = vmul.f32 %v3323_v29, %v3323_v29  ;;  %1265 = vmatpush1.bf16.msra.mxu0 %v2559_v27  ;;  %v2571_v34 = vcombine.low %v548_v50, %v552_v52 }
 0x222   :  { %1336 = vmatprep.subr.bf16.mxu1 %v2524_v46 }
 0x223   :  { %403 = vadd.xlane.f32.xlu1 %v402_v30  ;;  %v408_v33 = vadd.f32 %v407_v32, %v406_v31  ;;  %1337 = vmatpush1.bf16.msra.mxu1 %v2523_v42  ;;  %v2563_v30 = vcombine.low %v540_v15, %v544_v16  ;;  %v2568_v31 = vcombine.high %v546_v23, %v550_v26  ;;  %v471_v15 = vld [vmem:[#allocation8 + $0x168] sm:$0xff]  ;;  %v2784_v16 = vld [vmem:[#allocation10 + $0x30] ss:$8 sps:$4 sm:$0xff]  }
 0x224   :  { %1338 = vmatprep.subr.bf16.mxu1 %v2532_v53  ;;  %v2572_v32 = vcombine.high %v548_v50, %v552_v52  ;;  %v2490_v21 = vcombine.high %v467_v14, %v471_v15  ;;  %v2792_v50 = vld [vmem:[#allocation10 + $0x54] ss:$8 sps:$4 sm:$0xff]   ;;  %v2489_v52 = vcombine.low %v467_v14, %v471_v15 }
 0x225   :  { %1266 = vmatprep.subr.bf16.mxu0 %v2568_v31  ;;  %v487_v31 = vld [vmem:[#allocation8 + $0x1e8] sm:$0xff] }
 0x227   :  { %409 = vadd.xlane.f32.xlu1 %v408_v33  ;;  %1339 = vmatpush1.bf16.msra.mxu1 %v2531_v54  ;;  %v2567_v33 = vcombine.low %v546_v23, %v550_v26  ;;  %v479_v23 = vld [vmem:[#allocation8 + $0x1a8] sm:$0xff] }
 0x228   :  { %1340 = vmatprep.subr.bf16.mxu1 %v2540_v61  ;;  %v439_v61 = vld [vmem:[#allocation8 + $0x68] sm:$0xff] }
 0x229   :  { %1267 = vmatpush1.bf16.msra.mxu0 %v2567_v33  ;;  %v2457_v63 = vcombine.low %v435_v60, %v439_v61  ;;  %v2787_v26 = vld [vmem:[#allocation10 + $0x40] ss:$8 sps:$4 sm:$0xff]   ;;  %v2795_v33 = vld [vmem:[#allocation10 + $0x64] ss:$8 sps:$4 sm:$0xff]  }
 0x22a   :  { %1277 = vmatprep.subr.bf16.mxu0 %v2450_v43  ;;  %v495_v43 = vld [vmem:[#allocation8 + $0x228] sm:$0xff] }
 0x22b   :  { %1341 = vmatpush1.bf16.msra.mxu1 %v2539_v62  ;;  %v2458_v62 = vcombine.high %v435_v60, %v439_v61  ;;  %v515_v61 = vld [vmem:[#allocation8 + $0x2c8] sm:$0xff] }
 0x22c   :  { %1342 = vmatprep.subr.bf16.mxu1 %v2548_v7  ;;  %v2474_v7 = vcombine.high %v451_v2, %v455_v3 }
 0x22f   :  { %1343 = vmatpush1.bf16.msra.mxu1 %v2547_v8  ;;  %v459_v8 = vld [vmem:[#allocation8 + $0x108] sm:$0xff] }
 0x230   :  { %1344 = vmatprep.subr.bf16.mxu1 %v2556_v13  ;;  %v2482_v13 = vcombine.high %v459_v8, %v463_v9 }
 0x233   :  { %1345 = vmatpush1.bf16.msra.mxu1 %v2555_v18  ;;  %v2481_v18 = vcombine.low %v459_v8, %v463_v9  ;;  %v539_v8 = vld [vmem:[#allocation8 + $0x388] sm:$0xff] }
 0x234   :  { %1346 = vmatprep.subr.bf16.mxu1 %v2564_v22  ;;  %v475_v22 = vld [vmem:[#allocation8 + $0x188] sm:$0xff] }
 0x235   :  { %v2498_v27 = vcombine.high %v475_v22, %v479_v23  ;;  %v543_v9 = vld [vmem:[#allocation8 + $0x3a8] sm:$0xff] }
 0x236   :  { %v2561_v14 = vcombine.low %v539_v8, %v543_v9 }
 0x237   :  { %1347 = vmatpush1.bf16.msra.mxu1 %v2563_v30  ;;  %v483_v30 = vld [vmem:[#allocation8 + $0x1c8] sm:$0xff] }
 0x238   :  { %1348 = vmatprep.subr.bf16.mxu1 %v2572_v32  ;;  %v2790_v32 = vld [vmem:[#allocation10 + $0x50] ss:$8 sps:$4 sm:$0xff]   ;;  %v2506_v35 = vcombine.high %v483_v30, %v487_v31 }
 0x23b   :  { %1349 = vmatpush1.bf16.msra.mxu1 %v2571_v34  ;;  %v2497_v34 = vcombine.low %v475_v22, %v479_v23  ;;  %v437_v22 = vld [vmem:[#allocation8 + $0x58] sm:$0xff] }
 0x23c   :  { %v441_v23 = vld [vmem:[#allocation8 + $0x78] sm:$0xff] }
 0x2b0   :  { %v404_v41 = vpop.xlane.xlu1 %403 }
 0x2b1   :  { %v405_v46 = vmul.f32 0.00390625, %v404_v41  ;;  %v2798_v41 = vld [vmem:[#allocation10 + $0x74] ss:$8 sps:$4 sm:$0xff]  }
 0x2b3   :  { %v412_v44 = vmul.f32 %v405_v46, %v405_v46  ;;  %v414_v49 = vsub.f32 %v3320_v28, %v405_v46  ;;  %v415_v51 = vsub.f32 %v3323_v29, %v405_v46  ;;  %v2505_v46 = vcombine.low %v483_v30, %v487_v31 }
 0x2b4   :  { %v410_v42 = vpop.xlane.xlu1 %409  ;;  %v2461_v30 = vcombine.low %v437_v22, %v441_v23 }
 0x2b5   :  { %v411_v45 = vmul.f32 0.00390625, %v410_v42  ;;  %v2514_v42 = vcombine.high %v491_v36, %v495_v43 }
 0x2b7   :  { %v413_v47 = vsub.f32 %v411_v45, %v412_v44  ;;  %v499_v44 = vld [vmem:[#allocation8 + $0x248] sm:$0xff] }
 0x2b8   :  { %v503_v45 = vld [vmem:[#allocation8 + $0x268] sm:$0xff] }
 0x2b9   :  { %v416_v48 = vadd.f32 1e-05, %v413_v47  ;;  %v2796_v47 = vld [vmem:[#allocation10 + $0x70] ss:$8 sps:$4 sm:$0xff]  }
 0x2bb   :  { %2969 = vrsqrt.f32 %v416_v48  ;;  %v2801_v48 = vld [vmem:[#allocation10 + $0x84] ss:$8 sps:$4 sm:$0xff]  }
 0x2c5   :  { %v2970_v53 = vpop.eup %2969 }
 0x2c6   :  { %v419_v54 = vmul.f32 %v2970_v53, %v415_v51  ;;  %v418_v55 = vmul.f32 %v2970_v53, %v414_v49  ;;  %v2513_v49 = vcombine.low %v491_v36, %v495_v43  ;;  %v2522_v51 = vcombine.high %v499_v44, %v503_v45  ;;  %v507_v53 = vld [vmem:[#allocation8 + $0x288] sm:$0xff]  ;;  %v461_v36 = vld [vmem:[#allocation8 + $0x118] sm:$0xff] }
 0x2c7   :  { %v465_v43 = vld [vmem:[#allocation8 + $0x138] sm:$0xff] }
 0x2c8   :  { %v421_v56 = vmul.f32 %v419_v54, %v3307_v20  ;;  %v420_v57 = vmul.f32 %v418_v55, %v3304_v19  ;;  %v443_v19 = vld [vmem:[#allocation8 + $0x88] sm:$0xff] }
 0x2c9   :  { %v447_v20 = vld [vmem:[#allocation8 + $0xa8] sm:$0xff] }
 0x2ca   :  { %v3336_v58 = vadd.f32 %v421_v56, %v3313_v25  ;;  %v3339_v59 = vadd.f32 %v420_v57, %v3310_v24  ;;  %v2775_v24 = vld [vmem:[#allocation10] ss:$8 sps:$4 sm:$0xff]   ;;  %v2777_v25 = vld [vmem:[#allocation10 + $0x4] ss:$8 sps:$4 sm:$0xff]   ;;  %v2466_v1 = vcombine.high %v443_v19, %v447_v20  ;;  %v2465_v6 = vcombine.low %v443_v19, %v447_v20  ;;  %v2804_v56 = vld [vmem:[#allocation10 + $0x94] ss:$8 sps:$4 sm:$0xff]  }
 0x2cb   :  { %2228 = vmatprep.subr.bf16.mxu1 %v2777_v25  ;;  %v511_v54 = vld [vmem:[#allocation8 + $0x2a8] sm:$0xff]  ;;  %v2521_v57 = vcombine.low %v499_v44, %v503_v45  ;;  %v2802_v19 = vld [vmem:[#allocation10 + $0x90] ss:$8 sps:$4 sm:$0xff]   ;;  %v2485_v44 = vcombine.low %v461_v36, %v465_v43 }
 0x2cc   :  { %v3343_v28 = vpack.c.bf16 %v3336_v58, %v3336_v58  ;;  %v3347_v29 = vpack.c.bf16 %v3339_v59, %v3339_v59  ;;  %v2799_v55 = vld [vmem:[#allocation10 + $0x80] ss:$8 sps:$4 sm:$0xff]   ;;  %v2530_v60 = vcombine.high %v507_v53, %v511_v54  ;;  %v2807_v20 = vld [vmem:[#allocation10 + $0xa4] ss:$8 sps:$4 sm:$0xff]   ;;  %v477_v45 = vld [vmem:[#allocation8 + $0x198] sm:$0xff] }
 0x2ce   :  { %1268 = vmatprep.mubr.bf16.mxu0 %v3343_v28  ;;  %1350 = vmatprep.mubr.bf16.mxu1 %v3343_v28 }
 0x2cf   :  { %1269 = vmatmul.mubr.bf16.vlgmr.msra.gmra.mrb[4].mxu0 %v3347_v29  ;;  %1351 = vmatmul.mubr.bf16.vlgmr.msra.gmra.mrb[0].mxu1 %v3347_v29 }
 0x2d0   :  { %1278 = vmatpush1.bf16.msra.mxu0 %v2449_v39  ;;  %1309 = vmatprep.mubr.bf16.mxu0 %v3343_v28  ;;  %v2793_v39 = vld [vmem:[#allocation10 + $0x60] ss:$8 sps:$4 sm:$0xff]  }
 0x2d1   :  { %1279 = vmatprep.subr.bf16.mxu0 %v2458_v62  ;;  %2229 = vmatpush1.bf16.msra.mxu1 %v2775_v24  ;;  %v519_v62 = vld [vmem:[#allocation8 + $0x2e8] sm:$0xff]  ;;  %v2529_v24 = vcombine.low %v507_v53, %v511_v54  ;;  %v489_v53 = vld [vmem:[#allocation8 + $0x1f8] sm:$0xff] }
 0x2d2   :  { %2230 = vmatprep.subr.bf16.mxu1 %v2780_v0  ;;  %v2538_v25 = vcombine.high %v515_v61, %v519_v62  ;;  %v527_v0 = vld [vmem:[#allocation8 + $0x328] sm:$0xff]  ;;  %v2537_v2 = vcombine.low %v515_v61, %v519_v62  ;;  %v2808_v61 = vld [vmem:[#allocation10 + $0xb0] ss:$8 sps:$4 sm:$0xff]  }
 0x2d4   :  { %1280 = vmatpush1.bf16.msra.mxu0 %v2457_v63  ;;  %v523_v63 = vld [vmem:[#allocation8 + $0x308] sm:$0xff] }
 0x2d5   :  { %1281 = vmatprep.subr.bf16.mxu0 %v2466_v1  ;;  %2231 = vmatpush1.bf16.msra.mxu1 %v2778_v4  ;;  %v2805_v1 = vld [vmem:[#allocation10 + $0xa0] ss:$8 sps:$4 sm:$0xff]   ;;  %v2546_v3 = vcombine.high %v523_v63, %v527_v0 }
 0x2d6   :  { %2232 = vmatprep.subr.bf16.mxu1 %v2783_v5  ;;  %v531_v4 = vld [vmem:[#allocation8 + $0x348] sm:$0xff] }
 0x2d7   :  { %v535_v5 = vld [vmem:[#allocation8 + $0x368] sm:$0xff] }
 0x2d8   :  { %1282 = vmatpush1.bf16.msra.mxu0 %v2465_v6  ;;  %v2545_v6 = vcombine.low %v523_v63, %v527_v0  ;;  %v2811_v63 = vld [vmem:[#allocation10 + $0xc0] ss:$8 sps:$4 sm:$0xff]  }
 0x2d9   :  { %1283 = vmatprep.subr.bf16.mxu0 %v2474_v7  ;;  %2233 = vmatpush1.bf16.msra.mxu1 %v2781_v10  ;;  %v2554_v7 = vcombine.high %v531_v4, %v535_v5  ;;  %v2553_v10 = vcombine.low %v531_v4, %v535_v5  ;;  %v513_v4 = vld [vmem:[#allocation8 + $0x2b8] sm:$0xff] }
 0x2da   :  { %2234 = vmatprep.subr.bf16.mxu1 %v2786_v11  ;;  %v2562_v11 = vcombine.high %v539_v8, %v543_v9  ;;  %v2814_v5 = vld [vmem:[#allocation10 + $0xd0] ss:$8 sps:$4 sm:$0xff]   ;;  %v2819_v8 = vld [vmem:[#allocation10 + $0xe4] ss:$8 sps:$4 sm:$0xff]  }
 0x2db   :  { %v517_v9 = vld [vmem:[#allocation8 + $0x2d8] sm:$0xff] }
 0x2dc   :  { %1284 = vmatpush1.bf16.msra.mxu0 %v2473_v12  ;;  %v547_v12 = vld [vmem:[#allocation8 + $0x3c8] sm:$0xff] }
 0x2dd   :  { %1285 = vmatprep.subr.bf16.mxu0 %v2482_v13  ;;  %2235 = vmatpush1.bf16.msra.mxu1 %v2784_v16  ;;  %v551_v13 = vld [vmem:[#allocation8 + $0x3e8] sm:$0xff]  ;;  %v429_v16 = vld [vmem:[#allocation8 + $0x18] sm:$0xff] }
 0x2de   :  { %2236 = vmatprep.subr.bf16.mxu1 %v2789_v17  ;;  %v2570_v15 = vcombine.high %v547_v12, %v551_v13  ;;  %v433_v17 = vld [vmem:[#allocation8 + $0x38] sm:$0xff] }
 0x2e0   :  { %1286 = vmatpush1.bf16.msra.mxu0 %v2481_v18  ;;  %v2569_v18 = vcombine.low %v547_v12, %v551_v13 }
 0x2e1   :  { %1287 = vmatprep.subr.bf16.mxu0 %v2490_v21  ;;  %2237 = vmatpush1.bf16.msra.mxu1 %v2787_v26  ;;  %v2454_v21 = vcombine.high %v429_v16, %v433_v17  ;;  %v2453_v26 = vcombine.low %v429_v16, %v433_v17  ;;  %v529_v16 = vld [vmem:[#allocation8 + $0x338] sm:$0xff] }
 0x2e2   :  { %2238 = vmatprep.subr.bf16.mxu1 %v2792_v50  ;;  %v2462_v50 = vcombine.high %v437_v22, %v441_v23  ;;  %v2820_v17 = vld [vmem:[#allocation10 + $0xf0] ss:$8 sps:$4 sm:$0xff]   ;;  %v2825_v22 = vld [vmem:[#allocation10 + $0x104] ss:$8 sps:$4 sm:$0xff]  }
 0x2e3   :  { %v533_v23 = vld [vmem:[#allocation8 + $0x358] sm:$0xff] }
 0x2e4   :  { %1288 = vmatpush1.bf16.msra.mxu0 %v2489_v52  ;;  %v445_v52 = vld [vmem:[#allocation8 + $0x98] sm:$0xff] }
 0x2e5   :  { %1289 = vmatprep.subr.bf16.mxu0 %v2498_v27  ;;  %2239 = vmatpush1.bf16.msra.mxu1 %v2790_v32  ;;  %v449_v27 = vld [vmem:[#allocation8 + $0xb8] sm:$0xff] }
 0x2e6   :  { %2240 = vmatprep.subr.bf16.mxu1 %v2795_v33  ;;  %v2470_v31 = vcombine.high %v445_v52, %v449_v27  ;;  %v453_v32 = vld [vmem:[#allocation8 + $0xd8] sm:$0xff] }
 0x2e7   :  { %v457_v33 = vld [vmem:[#allocation8 + $0xf8] sm:$0xff] }
 0x2e8   :  { %1290 = vmatpush1.bf16.msra.mxu0 %v2497_v34  ;;  %v2469_v34 = vcombine.low %v445_v52, %v449_v27  ;;  %v541_v27 = vld [vmem:[#allocation8 + $0x398] sm:$0xff] }
 0x2e9   :  { %1291 = vmatprep.subr.bf16.mxu0 %v2506_v35  ;;  %2241 = vmatpush1.bf16.msra.mxu1 %v2793_v39  ;;  %v2478_v35 = vcombine.high %v453_v32, %v457_v33  ;;  %v2477_v39 = vcombine.low %v453_v32, %v457_v33  ;;  %v549_v33 = vld [vmem:[#allocation8 + $0x3d8] sm:$0xff] }
 0x2ea   :  { %2242 = vmatprep.subr.bf16.mxu1 %v2798_v41  ;;  %v2486_v41 = vcombine.high %v461_v36, %v465_v43 }
 0x2ec   :  { %1292 = vmatpush1.bf16.msra.mxu0 %v2505_v46  ;;  %v469_v46 = vld [vmem:[#allocation8 + $0x158] sm:$0xff] }
 0x2ed   :  { %1293 = vmatprep.subr.bf16.mxu0 %v2514_v42  ;;  %2243 = vmatpush1.bf16.msra.mxu1 %v2796_v47  ;;  %v473_v42 = vld [vmem:[#allocation8 + $0x178] sm:$0xff] }
 0x2ee   :  { %2244 = vmatprep.subr.bf16.mxu1 %v2801_v48  ;;  %v481_v47 = vld [vmem:[#allocation8 + $0x1b8] sm:$0xff]  ;;  %v2493_v48 = vcombine.low %v469_v46, %v473_v42 }
 0x2ef   :  { %v2501_v54 = vcombine.low %v477_v45, %v481_v47 }
 0x2f0   :  { %1294 = vmatpush1.bf16.msra.mxu0 %v2513_v49  ;;  %v2502_v49 = vcombine.high %v477_v45, %v481_v47 }
 0x2f1   :  { %1295 = vmatprep.subr.bf16.mxu0 %v2522_v51  ;;  %2245 = vmatpush1.bf16.msra.mxu1 %v2799_v55  ;;  %v485_v51 = vld [vmem:[#allocation8 + $0x1d8] sm:$0xff] }
 0x2f2   :  { %2246 = vmatprep.subr.bf16.mxu1 %v2804_v56  ;;  %v2510_v55 = vcombine.high %v485_v51, %v489_v53  ;;  %v2810_v56 = vld [vmem:[#allocation10 + $0xb4] ss:$8 sps:$4 sm:$0xff]   ;;  %v2509_v62 = vcombine.low %v485_v51, %v489_v53 }
 0x2f4   :  { %1296 = vmatpush1.bf16.msra.mxu0 %v2521_v57  ;;  %v493_v57 = vld [vmem:[#allocation8 + $0x218] sm:$0xff] }
 0x2f5   :  { %1297 = vmatprep.subr.bf16.mxu0 %v2530_v60  ;;  %2247 = vmatpush1.bf16.msra.mxu1 %v2802_v19  ;;  %v497_v60 = vld [vmem:[#allocation8 + $0x238] sm:$0xff] }
 0x2f6   :  { %2248 = vmatprep.subr.bf16.mxu1 %v2807_v20  ;;  %v2518_v19 = vcombine.high %v493_v57, %v497_v60  ;;  %v2813_v20 = vld [vmem:[#allocation10 + $0xc4] ss:$8 sps:$4 sm:$0xff]   ;;  %v2517_v0 = vcombine.low %v493_v57, %v497_v60 }
 0x2f8   :  { %1298 = vmatpush1.bf16.msra.mxu0 %v2529_v24  ;;  %v501_v24 = vld [vmem:[#allocation8 + $0x258] sm:$0xff] }
 0x2f9   :  { %1299 = vmatprep.subr.bf16.mxu0 %v2538_v25  ;;  %2249 = vmatpush1.bf16.msra.mxu1 %v2805_v1  ;;  %v505_v25 = vld [vmem:[#allocation8 + $0x278] sm:$0xff] }
 0x2fa   :  { %2250 = vmatprep.subr.bf16.mxu1 %v2810_v56  ;;  %v2526_v1 = vcombine.high %v501_v24, %v505_v25 }
 0x2fc   :  { %1300 = vmatpush1.bf16.msra.mxu0 %v2537_v2  ;;  %v2816_v2 = vld [vmem:[#allocation10 + $0xd4] ss:$8 sps:$4 sm:$0xff]  }
 0x2fd   :  { %1301 = vmatprep.subr.bf16.mxu0 %v2546_v3  ;;  %2251 = vmatpush1.bf16.msra.mxu1 %v2808_v61  ;;  %v509_v3 = vld [vmem:[#allocation8 + $0x298] sm:$0xff] }
 0x2fe   :  { %2252 = vmatprep.subr.bf16.mxu1 %v2813_v20  ;;  %v2533_v12 = vcombine.low %v509_v3, %v513_v4 }
 0x300   :  { %1302 = vmatpush1.bf16.msra.mxu0 %v2545_v6  ;;  %v2525_v6 = vcombine.low %v501_v24, %v505_v25 }
 0x301   :  { %1303 = vmatprep.subr.bf16.mxu0 %v2554_v7  ;;  %2253 = vmatpush1.bf16.msra.mxu1 %v2811_v63  ;;  %v2534_v7 = vcombine.high %v509_v3, %v513_v4  ;;  %v2823_v63 = vld [vmem:[#allocation10 + $0x100] ss:$8 sps:$4 sm:$0xff]   ;;  %v2831_v3 = vld [vmem:[#allocation10 + $0x124] ss:$8 sps:$4 sm:$0xff]  }
 0x302   :  { %2254 = vmatprep.subr.bf16.mxu1 %v2816_v2  ;;  %v2826_v2 = vld [vmem:[#allocation10 + $0x110] ss:$8 sps:$4 sm:$0xff]   ;;  %v2829_v4 = vld [vmem:[#allocation10 + $0x120] ss:$8 sps:$4 sm:$0xff]  }
 0x304   :  { %1304 = vmatpush1.bf16.msra.mxu0 %v2553_v10  ;;  %v521_v10 = vld [vmem:[#allocation8 + $0x2f8] sm:$0xff] }
 0x305   :  { %1305 = vmatprep.subr.bf16.mxu0 %v2562_v11  ;;  %2255 = vmatpush1.bf16.msra.mxu1 %v2814_v5  ;;  %v2817_v11 = vld [vmem:[#allocation10 + $0xe0] ss:$8 sps:$4 sm:$0xff]   ;;  %v2542_v13 = vcombine.high %v517_v9, %v521_v10  ;;  %v2834_v5 = vld [vmem:[#allocation10 + $0x134] ss:$8 sps:$4 sm:$0xff]  }
 0x306   :  { %2256 = vmatprep.subr.bf16.mxu1 %v2819_v8  ;;  %v2835_v8 = vld [vmem:[#allocation10 + $0x140] ss:$8 sps:$4 sm:$0xff]  }
 0x308   :  { %1306 = vmatpush1.bf16.msra.mxu0 %v2561_v14  ;;  %v2822_v14 = vld [vmem:[#allocation10 + $0xf4] ss:$8 sps:$4 sm:$0xff]  }
 0x309   :  { %1307 = vmatprep.subr.bf16.mxu0 %v2570_v15  ;;  %2257 = vmatpush1.bf16.msra.mxu1 %v2817_v11  ;;  %v525_v15 = vld [vmem:[#allocation8 + $0x318] sm:$0xff]  ;;  %v2843_v11 = vld [vmem:[#allocation10 + $0x164] ss:$8 sps:$4 sm:$0xff]  }
 0x30a   :  { %2258 = vmatprep.subr.bf16.mxu1 %v2822_v14  ;;  %v2844_v14 = vld [vmem:[#allocation10 + $0x170] ss:$8 sps:$4 sm:$0xff]  }
 0x30c   :  { %1308 = vmatpush1.bf16.msra.mxu0 %v2569_v18  ;;  %v2541_v18 = vcombine.low %v517_v9, %v521_v10  ;;  %v2840_v9 = vld [vmem:[#allocation10 + $0x154] ss:$8 sps:$4 sm:$0xff]   ;;  %v2838_v10 = vld [vmem:[#allocation10 + $0x150] ss:$8 sps:$4 sm:$0xff]  }
 0x30d   :  { %1359 = vmatprep.subr.bf16.mxu0 %v2454_v21  ;;  %2259 = vmatpush1.bf16.msra.mxu1 %v2820_v17  ;;  %v2550_v21 = vcombine.high %v525_v15, %v529_v16  ;;  %v2847_v17 = vld [vmem:[#allocation10 + $0x180] ss:$8 sps:$4 sm:$0xff]  }
 0x30e   :  { %2269 = vmatprep.subr.bf16.mxu1 %v2825_v22  ;;  %v566_v22 = vsub.s32 2, %v3266_v37 }
 0x30f   :  { %1310 = vmatmul.mubr.bf16.vlgmr.msra.gmra.mrb[8].mxu0 %v3347_v29 }
 0x310   :  { %1360 = vmatpush1.bf16.msra.mxu0 %v2453_v26  ;;  %1391 = vmatprep.mubr.bf16.mxu0 %v3343_v28  ;;  %v2494_v28 = vcombine.high %v469_v46, %v473_v42  ;;  %v537_v26 = vld [vmem:[#allocation8 + $0x378] sm:$0xff] }
 0x311   :  { %1361 = vmatprep.subr.bf16.mxu0 %v2462_v50  ;;  %v2549_v50 = vcombine.low %v525_v15, %v529_v16  ;;  %v2558_v52 = vcombine.high %v533_v23, %v537_v26  ;;  %v578_v15 = vsub.s32 5, %v3266_v37  ;;  %v2849_v16 = vld [vmem:[#allocation10 + $0x184] ss:$8 sps:$4 sm:$0xff]  }
 0x314   :  { %1362 = vmatpush1.bf16.msra.mxu0 %v2461_v30  ;;  %v545_v30 = vld [vmem:[#allocation8 + $0x3b8] sm:$0xff] }
 0x315   :  { %1363 = vmatprep.subr.bf16.mxu0 %v2470_v31  ;;  %v2557_v31 = vcombine.low %v533_v23, %v537_v26  ;;  %v2566_v32 = vcombine.high %v541_v27, %v545_v30  ;;  %v2850_v23 = vld [vmem:[#allocation10 + $0x190] ss:$8 sps:$4 sm:$0xff]   ;;  %v570_v26 = vsub.s32 3, %v3266_v37 }
 0x318   :  { %1364 = vmatpush1.bf16.msra.mxu0 %v2469_v34  ;;  %v553_v34 = vld [vmem:[#allocation8 + $0x3f8] sm:$0xff] }
 0x319   :  { %1365 = vmatprep.subr.bf16.mxu0 %v2478_v35  ;;  %v2565_v35 = vcombine.low %v541_v27, %v545_v30  ;;  %v2574_v36 = vcombine.high %v549_v33, %v553_v34  ;;  %v2573_v43 = vcombine.low %v549_v33, %v553_v34  ;;  %v2853_v30 = vld [vmem:[#allocation10 + $0x1a0] ss:$8 sps:$4 sm:$0xff]   ;;  %v2858_v33 = vld [vmem:[#allocation10 + $0x1b4] ss:$8 sps:$4 sm:$0xff]  }
 0x31c   :  { %1366 = vmatpush1.bf16.msra.mxu0 %v2477_v39  ;;  %v3360_v39 = vld [vmem:[%s3410_s7] sm:$0xff] }
 0x31d   :  { %1367 = vmatprep.subr.bf16.mxu0 %v2486_v41  ;;  %v559_v41 = vrot.slane %v3360_v39, %v3269_v38  ;;  %v563_v46 = vrot.slane %v3360_v39, %v3275_v40  ;;  %v567_v27 = vrot.slane %v3360_v39, %v566_v22  ;;  %v574_v22 = vsub.s32 4, %v3266_v37 }
 0x320   :  { %1368 = vmatpush1.bf16.msra.mxu0 %v2485_v44 }
 0x321   :  { %1369 = vmatprep.subr.bf16.mxu0 %v2494_v28 }
 0x324   :  { %1370 = vmatpush1.bf16.msra.mxu0 %v2493_v48 }
 0x325   :  { %1371 = vmatprep.subr.bf16.mxu0 %v2502_v49 }
 0x328   :  { %1372 = vmatpush1.bf16.msra.mxu0 %v2501_v54 }
 0x329   :  { %1373 = vmatprep.subr.bf16.mxu0 %v2510_v55 }
 0x32c   :  { %1374 = vmatpush1.bf16.msra.mxu0 %v2509_v62 }
 0x32d   :  { %1375 = vmatprep.subr.bf16.mxu0 %v2518_v19 }
 0x330   :  { %1376 = vmatpush1.bf16.msra.mxu0 %v2517_v0 }
 0x331   :  { %1377 = vmatprep.subr.bf16.mxu0 %v2526_v1  ;;  %v2828_v1 = vld [vmem:[#allocation10 + $0x114] ss:$8 sps:$4 sm:$0xff]  }
 0x334   :  { %1378 = vmatpush1.bf16.msra.mxu0 %v2525_v6  ;;  %v2832_v6 = vld [vmem:[#allocation10 + $0x130] ss:$8 sps:$4 sm:$0xff]  }
 0x335   :  { %1379 = vmatprep.subr.bf16.mxu0 %v2534_v7  ;;  %v2837_v7 = vld [vmem:[#allocation10 + $0x144] ss:$8 sps:$4 sm:$0xff]  }
 0x338   :  { %1380 = vmatpush1.bf16.msra.mxu0 %v2533_v12  ;;  %v2841_v12 = vld [vmem:[#allocation10 + $0x160] ss:$8 sps:$4 sm:$0xff]  }
 0x339   :  { %1381 = vmatprep.subr.bf16.mxu0 %v2542_v13  ;;  %v2846_v13 = vld [vmem:[#allocation10 + $0x174] ss:$8 sps:$4 sm:$0xff]  }
 0x33c   :  { %1382 = vmatpush1.bf16.msra.mxu0 %v2541_v18  ;;  %v579_v18 = vrot.slane %v3360_v39, %v578_v15  ;;  %v2888_v15 = vld [vmem:[#allocation10 + $0x254] ss:$8 sps:$4 sm:$0xff]  }
 0x33d   :  { %1383 = vmatprep.subr.bf16.mxu0 %v2550_v21  ;;  %v2852_v21 = vld [vmem:[#allocation10 + $0x194] ss:$8 sps:$4 sm:$0xff]  }
 0x340   :  { %1384 = vmatpush1.bf16.msra.mxu0 %v2549_v50 }
 0x341   :  { %1385 = vmatprep.subr.bf16.mxu0 %v2558_v52  ;;  %v2855_v52 = vld [vmem:[#allocation10 + $0x1a4] ss:$8 sps:$4 sm:$0xff]  }
 0x344   :  { %1386 = vmatpush1.bf16.msra.mxu0 %v2557_v31  ;;  %v571_v31 = vrot.slane %v3360_v39, %v570_v26  ;;  %v2897_v26 = vld [vmem:[#allocation10 + $0x284] ss:$8 sps:$4 sm:$0xff]  }
 0x345   :  { %1387 = vmatprep.subr.bf16.mxu0 %v2566_v32 }
 0x348   :  { %1388 = vmatpush1.bf16.msra.mxu0 %v2565_v35 }
 0x349   :  { %1389 = vmatprep.subr.bf16.mxu0 %v2574_v36 }
 0x34c   :  { %1390 = vmatpush1.bf16.msra.mxu0 %v2573_v43 }
 0x34f   :  { %1392 = vmatmul.mubr.bf16.vlgmr.msra.gmra.mrb[12].mxu0 %v3347_v29 }
 0x3a2   :  { %v1270_v42 = vpop.f32.mrb[4].mxu0  ;;  %v3366_v44 = vpop.f32.mrb[0].mxu1 }
 0x3a3   :  { %v1271_v28 = vadd.f32 %v1270_v42, %v559_v41  ;;  %v1272_v45 = vpop.f32.mrb[5].mxu0  ;;  %v1354_v47 = vpop.f32.mrb[1].mxu1 }
 0x3a4   :  { %v1273_v48 = vadd.f32 %v1272_v45, %v563_v46  ;;  %v1274_v49 = vpop.f32.mrb[6].mxu0  ;;  %v1356_v29 = vpop.f32.mrb[2].mxu1  ;;  %v1355_v50 = vadd.f32 %v1354_v47, %v579_v18  ;;  %v2856_v46 = vld [vmem:[#allocation10 + $0x1b0] ss:$8 sps:$4 sm:$0xff]   ;;  %v2861_v45 = vld [vmem:[#allocation10 + $0x1c4] ss:$8 sps:$4 sm:$0xff]  }
 0x3a5   :  { %v1408_v51 = vmul.f32 0.70710677, %v1271_v28  ;;  %v1275_v54 = vpop.f32.mrb[7].mxu0  ;;  %v1357_v55 = vpop.f32.mrb[3].mxu1  ;;  %v1400_v61 = vmul.f32 0.5, %v1271_v28 }
 0x3a6   :  { %v1409_v53 = vmul.f32 0.70710677, %v1273_v48  ;;  %v1401_v62 = vmul.f32 0.5, %v1273_v48  ;;  %v1413_v32 = vmul.f32 0.70710677, %v1355_v50 }
 0x3a7   :  { %2971 = verf.f32 %v1408_v51  ;;  %v2859_v48 = vld [vmem:[#allocation10 + $0x1c0] ss:$8 sps:$4 sm:$0xff]   ;;  %v2864_v49 = vld [vmem:[#allocation10 + $0x1d4] ss:$8 sps:$4 sm:$0xff]   ;;  %v2862_v29 = vld [vmem:[#allocation10 + $0x1d0] ss:$8 sps:$4 sm:$0xff]  }
 0x3a8   :  { %2973 = verf.f32 %v1409_v53  ;;  %v2867_v51 = vld [vmem:[#allocation10 + $0x1e4] ss:$8 sps:$4 sm:$0xff]   ;;  %v2865_v54 = vld [vmem:[#allocation10 + $0x1e0] ss:$8 sps:$4 sm:$0xff]  }
 0x3a9   :  { %2975 = verf.f32 %v1413_v32  ;;  %v2889_v18 = vld [vmem:[#allocation10 + $0x260] ss:$8 sps:$4 sm:$0xff]   ;;  %v586_v32 = vsub.s32 7, %v3266_v37 }
 0x3b1   :  { %v2972_v56 = vpop.eup %2971 }
 0x3b2   :  { %v1424_v57 = vadd.f32 1.0, %v2972_v56  ;;  %v2974_v60 = vpop.eup %2973  ;;  %v2870_v56 = vld [vmem:[#allocation10 + $0x1f4] ss:$8 sps:$4 sm:$0xff]  }
 0x3b3   :  { %v1425_v19 = vadd.f32 1.0, %v2974_v60  ;;  %v2976_v53 = vpop.eup %2975 }
 0x3b4   :  { %v1432_v20 = vmul.f32 %v1424_v57, %v1400_v61  ;;  %v1429_v60 = vadd.f32 1.0, %v2976_v53  ;;  %v2915_v53 = vld [vmem:[#allocation10 + $0x2e4] ss:$8 sps:$4 sm:$0xff]  }
 0x3b5   :  { %v1433_v24 = vmul.f32 %v1425_v19, %v1401_v62 }
 0x3b6   :  { %v1440_v0 = vpack.c.bf16 %v1432_v20, %v1432_v20 }
 0x3b7   :  { %v1441_v25 = vpack.c.bf16 %v1433_v24, %v1433_v24  ;;  %v1405_v24 = vmul.f32 0.5, %v1355_v50  ;;  %v575_v50 = vrot.slane %v3360_v39, %v574_v22  ;;  %v2943_v22 = vld [vmem:[#allocation10 + $0x380] ss:$8 sps:$4 sm:$0xff]  }
 0x3b9   :  { %2260 = vmatprep.mubr.bf16.mxu1 %v1441_v25  ;;  %v2868_v25 = vld [vmem:[#allocation10 + $0x1f0] ss:$8 sps:$4 sm:$0xff]  }
 0x3ba   :  { %2261 = vmatmul.mubr.bf16.vlgmr.msra.gmra.mrb[4].mxu1 %v1440_v0 }
 0x3bb   :  { %2270 = vmatpush1.bf16.msra.mxu1 %v2823_v63 }
 0x3bc   :  { %2271 = vmatprep.subr.bf16.mxu1 %v2828_v1  ;;  %v2873_v1 = vld [vmem:[#allocation10 + $0x204] ss:$8 sps:$4 sm:$0xff]  }
 0x3bf   :  { %2272 = vmatpush1.bf16.msra.mxu1 %v2826_v2  ;;  %v1437_v2 = vmul.f32 %v1429_v60, %v1405_v24 }
 0x3c0   :  { %2273 = vmatprep.subr.bf16.mxu1 %v2831_v3 }
 0x3c3   :  { %2274 = vmatpush1.bf16.msra.mxu1 %v2829_v4  ;;  %v2871_v4 = vld [vmem:[#allocation10 + $0x200] ss:$8 sps:$4 sm:$0xff]  }
 0x3c4   :  { %2275 = vmatprep.subr.bf16.mxu1 %v2834_v5 }
 0x3c7   :  { %2276 = vmatpush1.bf16.msra.mxu1 %v2832_v6  ;;  %v2876_v6 = vld [vmem:[#allocation10 + $0x214] ss:$8 sps:$4 sm:$0xff]  }
 0x3c8   :  { %2277 = vmatprep.subr.bf16.mxu1 %v2837_v7  ;;  %v1445_v7 = vpack.c.bf16 %v1437_v2, %v1437_v2  ;;  %v2924_v2 = vld [vmem:[#allocation10 + $0x314] ss:$8 sps:$4 sm:$0xff]  }
 0x3cb   :  { %2278 = vmatpush1.bf16.msra.mxu1 %v2835_v8  ;;  %v2874_v8 = vld [vmem:[#allocation10 + $0x210] ss:$8 sps:$4 sm:$0xff]  }
 0x3cc   :  { %2279 = vmatprep.subr.bf16.mxu1 %v2840_v9  ;;  %v2879_v9 = vld [vmem:[#allocation10 + $0x224] ss:$8 sps:$4 sm:$0xff]  }
 0x3cf   :  { %2280 = vmatpush1.bf16.msra.mxu1 %v2838_v10  ;;  %v2877_v10 = vld [vmem:[#allocation10 + $0x220] ss:$8 sps:$4 sm:$0xff]  }
 0x3d0   :  { %2281 = vmatprep.subr.bf16.mxu1 %v2843_v11  ;;  %v2882_v11 = vld [vmem:[#allocation10 + $0x234] ss:$8 sps:$4 sm:$0xff]  }
 0x3d3   :  { %2282 = vmatpush1.bf16.msra.mxu1 %v2841_v12  ;;  %v2880_v12 = vld [vmem:[#allocation10 + $0x230] ss:$8 sps:$4 sm:$0xff]  }
 0x3d4   :  { %2283 = vmatprep.subr.bf16.mxu1 %v2846_v13  ;;  %v2885_v13 = vld [vmem:[#allocation10 + $0x244] ss:$8 sps:$4 sm:$0xff]  }
 0x3d7   :  { %2284 = vmatpush1.bf16.msra.mxu1 %v2844_v14  ;;  %v2883_v14 = vld [vmem:[#allocation10 + $0x240] ss:$8 sps:$4 sm:$0xff]  }
 0x3d8   :  { %2285 = vmatprep.subr.bf16.mxu1 %v2849_v16  ;;  %v2886_v16 = vld [vmem:[#allocation10 + $0x250] ss:$8 sps:$4 sm:$0xff]  }
 0x3db   :  { %2286 = vmatpush1.bf16.msra.mxu1 %v2847_v17  ;;  %v2891_v17 = vld [vmem:[#allocation10 + $0x264] ss:$8 sps:$4 sm:$0xff]  }
 0x3dc   :  { %2287 = vmatprep.subr.bf16.mxu1 %v2852_v21  ;;  %v2894_v21 = vld [vmem:[#allocation10 + $0x274] ss:$8 sps:$4 sm:$0xff]  }
 0x3df   :  { %2288 = vmatpush1.bf16.msra.mxu1 %v2850_v23  ;;  %v2892_v23 = vld [vmem:[#allocation10 + $0x270] ss:$8 sps:$4 sm:$0xff]  }
 0x3e0   :  { %2289 = vmatprep.subr.bf16.mxu1 %v2855_v52  ;;  %v2895_v52 = vld [vmem:[#allocation10 + $0x280] ss:$8 sps:$4 sm:$0xff]  }
 0x3e2   :  { %v1311_v34 = vpop.f32.mrb[8].mxu0 }
 0x3e3   :  { %v1312_v35 = vadd.f32 %v1311_v34, %v567_v27  ;;  %v1313_v36 = vpop.f32.mrb[9].mxu0  ;;  %2290 = vmatpush1.bf16.msra.mxu1 %v2853_v30  ;;  %v2900_v27 = vld [vmem:[#allocation10 + $0x294] ss:$8 sps:$4 sm:$0xff]   ;;  %v1353_v30 = vadd.f32 %v3366_v44, %v575_v50  ;;  %v2946_v50 = vld [vmem:[#allocation10 + $0x390] ss:$8 sps:$4 sm:$0xff]  }
 0x3e4   :  { %v1314_v43 = vadd.f32 %v1313_v36, %v571_v31  ;;  %v1315_v41 = vpop.f32.mrb[10].mxu0  ;;  %2291 = vmatprep.subr.bf16.mxu1 %v2858_v33  ;;  %v2898_v31 = vld [vmem:[#allocation10 + $0x290] ss:$8 sps:$4 sm:$0xff]   ;;  %v2903_v33 = vld [vmem:[#allocation10 + $0x2a4] ss:$8 sps:$4 sm:$0xff]   ;;  %v587_v36 = vrot.slane %v3360_v39, %v586_v32 }
 0x3e5   :  { %v1410_v42 = vmul.f32 0.70710677, %v1312_v35  ;;  %v1316_v28 = vpop.f32.mrb[11].mxu0  ;;  %v1402_v62 = vmul.f32 0.5, %v1312_v35  ;;  %v1412_v34 = vmul.f32 0.70710677, %v1353_v30 }
 0x3e6   :  { %v1411_v47 = vmul.f32 0.70710677, %v1314_v43  ;;  %v1403_v19 = vmul.f32 0.5, %v1314_v43  ;;  %v2901_v35 = vld [vmem:[#allocation10 + $0x2a0] ss:$8 sps:$4 sm:$0xff]  }
 0x3e7   :  { %2977 = verf.f32 %v1410_v42  ;;  %2292 = vmatpush1.bf16.msra.mxu1 %v2856_v46  ;;  %v2906_v43 = vld [vmem:[#allocation10 + $0x2b4] ss:$8 sps:$4 sm:$0xff]   ;;  %v2904_v28 = vld [vmem:[#allocation10 + $0x2b0] ss:$8 sps:$4 sm:$0xff]   ;;  %v2955_v32 = vld [vmem:[#allocation10 + $0x3c0] ss:$8 sps:$4 sm:$0xff]  }
 0x3e8   :  { %2979 = verf.f32 %v1411_v47  ;;  %2293 = vmatprep.subr.bf16.mxu1 %v2861_v45  ;;  %v2909_v47 = vld [vmem:[#allocation10 + $0x2c4] ss:$8 sps:$4 sm:$0xff]  }
 0x3e9   :  { %2981 = verf.f32 %v1412_v34  ;;  %v2958_v34 = vld [vmem:[#allocation10 + $0x3d0] ss:$8 sps:$4 sm:$0xff]  }
 0x3eb   :  { %2294 = vmatpush1.bf16.msra.mxu1 %v2859_v48 }
 0x3ec   :  { %2295 = vmatprep.subr.bf16.mxu1 %v2864_v49  ;;  %v2907_v49 = vld [vmem:[#allocation10 + $0x2c0] ss:$8 sps:$4 sm:$0xff]  }
 0x3ef   :  { %2296 = vmatpush1.bf16.msra.mxu1 %v2862_v29  ;;  %v2912_v29 = vld [vmem:[#allocation10 + $0x2d4] ss:$8 sps:$4 sm:$0xff]  }
 0x3f0   :  { %2297 = vmatprep.subr.bf16.mxu1 %v2867_v51  ;;  %v2910_v51 = vld [vmem:[#allocation10 + $0x2d0] ss:$8 sps:$4 sm:$0xff]  }
 0x3f1   :  { %v2978_v55 = vpop.eup %2977 }
 0x3f2   :  { %v2980_v57 = vpop.eup %2979  ;;  %v1426_v61 = vadd.f32 1.0, %v2978_v55  ;;  %v2913_v55 = vld [vmem:[#allocation10 + $0x2e0] ss:$8 sps:$4 sm:$0xff]  }
 0x3f3   :  { %v1427_v20 = vadd.f32 1.0, %v2980_v57  ;;  %2298 = vmatpush1.bf16.msra.mxu1 %v2865_v54  ;;  %v2982_v54 = vpop.eup %2981  ;;  %v2918_v57 = vld [vmem:[#allocation10 + $0x2f4] ss:$8 sps:$4 sm:$0xff]  }
 0x3f4   :  { %v1434_v63 = vmul.f32 %v1426_v61, %v1402_v62  ;;  %2299 = vmatprep.subr.bf16.mxu1 %v2870_v56  ;;  %v1428_v56 = vadd.f32 1.0, %v2982_v54  ;;  %v1404_v61 = vmul.f32 0.5, %v1353_v30  ;;  %v2949_v30 = vld [vmem:[#allocation10 + $0x3a0] ss:$8 sps:$4 sm:$0xff]  }
 0x3f5   :  { %v1435_v0 = vmul.f32 %v1427_v20, %v1403_v19  ;;  %v2916_v20 = vld [vmem:[#allocation10 + $0x2f0] ss:$8 sps:$4 sm:$0xff]  }
 0x3f6   :  { %v1442_v5 = vpack.c.bf16 %v1434_v63, %v1434_v63  ;;  %v1436_v24 = vmul.f32 %v1428_v56, %v1404_v61 }
 0x3f7   :  { %v1443_v3 = vpack.c.bf16 %v1435_v0, %v1435_v0  ;;  %2300 = vmatpush1.bf16.msra.mxu1 %v2868_v25  ;;  %v2921_v25 = vld [vmem:[#allocation10 + $0x304] ss:$8 sps:$4 sm:$0xff]   ;;  %v2919_v0 = vld [vmem:[#allocation10 + $0x300] ss:$8 sps:$4 sm:$0xff]  }
 0x3f8   :  { %2310 = vmatprep.subr.bf16.mxu1 %v2873_v1  ;;  %v1444_v1 = vpack.c.bf16 %v1436_v24, %v1436_v24 }
 0x3f9   :  { %2301 = vmatprep.mubr.bf16.mxu1 %v1443_v3 }
 0x3fa   :  { %2302 = vmatmul.mubr.bf16.vlgmr.msra.gmra.mrb[4].mxu1 %v1442_v5  ;;  %v2927_v5 = vld [vmem:[#allocation10 + $0x324] ss:$8 sps:$4 sm:$0xff]  }
 0x3fb   :  { %2311 = vmatpush1.bf16.msra.mxu1 %v2871_v4  ;;  %2342 = vmatprep.mubr.bf16.mxu1 %v1445_v7  ;;  %v2922_v4 = vld [vmem:[#allocation10 + $0x310] ss:$8 sps:$4 sm:$0xff]   ;;  %v2930_v7 = vld [vmem:[#allocation10 + $0x334] ss:$8 sps:$4 sm:$0xff]  }
 0x3fc   :  { %2312 = vmatprep.subr.bf16.mxu1 %v2876_v6  ;;  %v2925_v6 = vld [vmem:[#allocation10 + $0x320] ss:$8 sps:$4 sm:$0xff]  }
 0x3ff   :  { %2313 = vmatpush1.bf16.msra.mxu1 %v2874_v8  ;;  %v2928_v8 = vld [vmem:[#allocation10 + $0x330] ss:$8 sps:$4 sm:$0xff]  }
 0x400   :  { %2314 = vmatprep.subr.bf16.mxu1 %v2879_v9  ;;  %v2933_v9 = vld [vmem:[#allocation10 + $0x344] ss:$8 sps:$4 sm:$0xff]  }
 0x403   :  { %2315 = vmatpush1.bf16.msra.mxu1 %v2877_v10  ;;  %v2931_v10 = vld [vmem:[#allocation10 + $0x340] ss:$8 sps:$4 sm:$0xff]  }
 0x404   :  { %2316 = vmatprep.subr.bf16.mxu1 %v2882_v11  ;;  %v2936_v11 = vld [vmem:[#allocation10 + $0x354] ss:$8 sps:$4 sm:$0xff]  }
 0x407   :  { %2317 = vmatpush1.bf16.msra.mxu1 %v2880_v12  ;;  %v2934_v12 = vld [vmem:[#allocation10 + $0x350] ss:$8 sps:$4 sm:$0xff]  }
 0x408   :  { %2318 = vmatprep.subr.bf16.mxu1 %v2885_v13  ;;  %v2939_v13 = vld [vmem:[#allocation10 + $0x364] ss:$8 sps:$4 sm:$0xff]  }
 0x40b   :  { %2319 = vmatpush1.bf16.msra.mxu1 %v2883_v14  ;;  %v2937_v14 = vld [vmem:[#allocation10 + $0x360] ss:$8 sps:$4 sm:$0xff]  }
 0x40c   :  { %2320 = vmatprep.subr.bf16.mxu1 %v2888_v15  ;;  %v2942_v15 = vld [vmem:[#allocation10 + $0x374] ss:$8 sps:$4 sm:$0xff]  }
 0x40f   :  { %2321 = vmatpush1.bf16.msra.mxu1 %v2886_v16  ;;  %v582_v16 = vsub.s32 6, %v3266_v37  ;;  %v2954_v37 = vld [vmem:[#allocation10 + $0x3b4] ss:$8 sps:$4 sm:$0xff]  }
 0x410   :  { %2322 = vmatprep.subr.bf16.mxu1 %v2891_v17  ;;  %v2940_v17 = vld [vmem:[#allocation10 + $0x370] ss:$8 sps:$4 sm:$0xff]  }
 0x413   :  { %2323 = vmatpush1.bf16.msra.mxu1 %v2889_v18  ;;  %v2945_v18 = vld [vmem:[#allocation10 + $0x384] ss:$8 sps:$4 sm:$0xff]  }
 0x414   :  { %2324 = vmatprep.subr.bf16.mxu1 %v2894_v21  ;;  %v583_v21 = vrot.slane %v3360_v39, %v582_v16  ;;  %v2957_v39 = vld [vmem:[#allocation10 + $0x3c4] ss:$8 sps:$4 sm:$0xff]  }
 0x417   :  { %2325 = vmatpush1.bf16.msra.mxu1 %v2892_v23  ;;  %v2948_v23 = vld [vmem:[#allocation10 + $0x394] ss:$8 sps:$4 sm:$0xff]  }
 0x418   :  { %2326 = vmatprep.subr.bf16.mxu1 %v2897_v26 }
 0x41b   :  { %2327 = vmatpush1.bf16.msra.mxu1 %v2895_v52  ;;  %v2951_v52 = vld [vmem:[#allocation10 + $0x3a4] ss:$8 sps:$4 sm:$0xff]  }
 0x41c   :  { %2328 = vmatprep.subr.bf16.mxu1 %v2900_v27 }
 0x41f   :  { %2329 = vmatpush1.bf16.msra.mxu1 %v2898_v31  ;;  %v2952_v31 = vld [vmem:[#allocation10 + $0x3b0] ss:$8 sps:$4 sm:$0xff]  }
 0x420   :  { %2330 = vmatprep.subr.bf16.mxu1 %v2903_v33  ;;  %v2960_v33 = vld [vmem:[#allocation10 + $0x3d4] ss:$8 sps:$4 sm:$0xff]  }
 0x422   :  { %v3379_v41 = vpop.f32.mrb[12].mxu0 }
 0x423   :  { %v1395_v46 = vpop.f32.mrb[13].mxu0  ;;  %2331 = vmatpush1.bf16.msra.mxu1 %v2901_v35  ;;  %v1394_v26 = vadd.f32 %v3379_v41, %v583_v21  ;;  %v2963_v35 = vld [vmem:[#allocation10 + $0x3e4] ss:$8 sps:$4 sm:$0xff]  }
 0x424   :  { %v1396_v42 = vadd.f32 %v1395_v46, %v587_v36  ;;  %v1397_v44 = vpop.f32.mrb[14].mxu0  ;;  %2332 = vmatprep.subr.bf16.mxu1 %v2906_v43  ;;  %v2961_v43 = vld [vmem:[#allocation10 + $0x3e0] ss:$8 sps:$4 sm:$0xff]   ;;  %v2966_v46 = vld [vmem:[#allocation10 + $0x3f4] ss:$8 sps:$4 sm:$0xff]  }
 0x425   :  { %v1398_v45 = vpop.f32.mrb[15].mxu0  ;;  %v1414_v27 = vmul.f32 0.70710677, %v1394_v26  ;;  %v2964_v44 = vld [vmem:[#allocation10 + $0x3f0] ss:$8 sps:$4 sm:$0xff]  }
 0x426   :  { %v1415_v48 = vmul.f32 0.70710677, %v1396_v42  ;;  %v1407_v19 = vmul.f32 0.5, %v1396_v42  ;;  %v1406_v42 = vmul.f32 0.5, %v1394_v26 }
 0x427   :  { %2333 = vmatpush1.bf16.msra.mxu1 %v2904_v28 }
 0x428   :  { %2983 = verf.f32 %v1415_v48  ;;  %2334 = vmatprep.subr.bf16.mxu1 %v2909_v47  ;;  %v1576_v47 = vld [vmem:[%s3412_s9] sm:$0x3]  ;;  %s3097_s9 = scalar_lea.vmem %s2405_s17, 256 }
 0x429   :  { %2985 = verf.f32 %v1414_v27  ;;  %v1581_v48 = vrot.slane %v1576_v47, %v3269_v38  ;;  %p3098_p12 = scmp.ne.s32.totalorder %s2405_s17, %s3097_s9  ;;  %p3103_p0 = scmp.lt.s32.totalorder %s3097_s9, %s3097_s9 }
 0x42b   :  { %2335 = vmatpush1.bf16.msra.mxu1 %v2907_v49  ;;  %v1585_v49 = vrot.slane %v1576_v47, %v3275_v40  ;;  %p3104_p1 = por %p3103_p0, %p3102_p13 }
 0x42c   :  { %2336 = vmatprep.subr.bf16.mxu1 %v2912_v29 }
 0x42d   :  { %p3105_p2 = pnand %p3104_p1, %p3098_p12 }
 0x42f   :  { %2337 = vmatpush1.bf16.msra.mxu1 %v2910_v51 }
 0x430   :  { %2338 = vmatprep.subr.bf16.mxu1 %v2915_v53 }
 0x432   :  { %v2984_v60 = vpop.eup %2983 }
 0x433   :  { %v1431_v62 = vadd.f32 1.0, %v2984_v60  ;;  %2339 = vmatpush1.bf16.msra.mxu1 %v2913_v55  ;;  %v2986_v36 = vpop.eup %2985 }
 0x434   :  { %2340 = vmatprep.subr.bf16.mxu1 %v2918_v57  ;;  %v1430_v41 = vadd.f32 1.0, %v2986_v36 }
 0x435   :  { %v1439_v63 = vmul.f32 %v1431_v62, %v1407_v19 }
 0x436   :  { %v1438_v28 = vmul.f32 %v1430_v41, %v1406_v42 }
 0x437   :  { %2341 = vmatpush1.bf16.msra.mxu1 %v2916_v20  ;;  %v1447_v3 = vpack.c.bf16 %v1439_v63, %v1439_v63 }
 0x438   :  { %2351 = vmatprep.subr.bf16.mxu1 %v2921_v25  ;;  %v1446_v45 = vpack.c.bf16 %v1438_v28, %v1438_v28 }
 0x43a   :  { %2343 = vmatmul.mubr.bf16.vlgmr.msra.gmra.mrb[4].mxu1 %v1444_v1 }
 0x43b   :  { %2352 = vmatpush1.bf16.msra.mxu1 %v2919_v0  ;;  %2383 = vmatprep.mubr.bf16.mxu1 %v1447_v3 }
 0x43c   :  { %2353 = vmatprep.subr.bf16.mxu1 %v2924_v2 }
 0x43f   :  { %2354 = vmatpush1.bf16.msra.mxu1 %v2922_v4 }
 0x440   :  { %2355 = vmatprep.subr.bf16.mxu1 %v2927_v5 }
 0x443   :  { %2356 = vmatpush1.bf16.msra.mxu1 %v2925_v6 }
 0x444   :  { %2357 = vmatprep.subr.bf16.mxu1 %v2930_v7 }
 0x447   :  { %2358 = vmatpush1.bf16.msra.mxu1 %v2928_v8 }
 0x448   :  { %2359 = vmatprep.subr.bf16.mxu1 %v2933_v9 }
 0x44b   :  { %2360 = vmatpush1.bf16.msra.mxu1 %v2931_v10 }
 0x44c   :  { %2361 = vmatprep.subr.bf16.mxu1 %v2936_v11 }
 0x44f   :  { %2362 = vmatpush1.bf16.msra.mxu1 %v2934_v12 }
 0x450   :  { %2363 = vmatprep.subr.bf16.mxu1 %v2939_v13 }
 0x453   :  { %2364 = vmatpush1.bf16.msra.mxu1 %v2937_v14 }
 0x454   :  { %2365 = vmatprep.subr.bf16.mxu1 %v2942_v15 }
 0x457   :  { %2366 = vmatpush1.bf16.msra.mxu1 %v2940_v17 }
 0x458   :  { %2367 = vmatprep.subr.bf16.mxu1 %v2945_v18 }
 0x45b   :  { %2368 = vmatpush1.bf16.msra.mxu1 %v2943_v22 }
 0x45c   :  { %2369 = vmatprep.subr.bf16.mxu1 %v2948_v23 }
 0x45f   :  { %2370 = vmatpush1.bf16.msra.mxu1 %v2946_v50 }
 0x460   :  { %2371 = vmatprep.subr.bf16.mxu1 %v2951_v52 }
 0x463   :  { %2372 = vmatpush1.bf16.msra.mxu1 %v2949_v30 }
 0x464   :  { %2373 = vmatprep.subr.bf16.mxu1 %v2954_v37 }
 0x467   :  { %2374 = vmatpush1.bf16.msra.mxu1 %v2952_v31 }
 0x468   :  { %2375 = vmatprep.subr.bf16.mxu1 %v2957_v39 }
 0x46b   :  { %2376 = vmatpush1.bf16.msra.mxu1 %v2955_v32 }
 0x46c   :  { %2377 = vmatprep.subr.bf16.mxu1 %v2960_v33 }
 0x46f   :  { %2378 = vmatpush1.bf16.msra.mxu1 %v2958_v34 }
 0x470   :  { %2379 = vmatprep.subr.bf16.mxu1 %v2963_v35 }
 0x473   :  { %2380 = vmatpush1.bf16.msra.mxu1 %v2961_v43 }
 0x474   :  { %2381 = vmatprep.subr.bf16.mxu1 %v2966_v46 }
 0x477   :  { %2382 = vmatpush1.bf16.msra.mxu1 %v2964_v44 }
 0x47a   :  { %2384 = vmatmul.mubr.bf16.vlgmr.msra.gmra.mrb[4].mxu1 %v1446_v45 }
 0x54d   :  { %v2385_v29 = vpop.f32.mrb[4].mxu1 }
 0x54e   :  { %v2703_v51 = vadd.f32 %v2385_v29, %v1581_v48  ;;  %v2387_v53 = vpop.f32.mrb[5].mxu1 }
 0x54f   :  { %v2704_v54 = vadd.f32 %v2387_v53, %v1585_v49  ;;  %v2389_v55 = vpop.f32.mrb[6].mxu1 }
 0x550   :  { %v2392_v56 = vmul.f32 0.5, %v2703_v51  ;;  %v2390_v57 = vpop.f32.mrb[7].mxu1 }
 0x551   :  { %v2393_v60 = vmul.f32 0.5, %v2704_v54 }
 0x552   :  { %v2394_v61 = vadd.f32 %v2392_v56, %v3339_v59 }
 0x553   :  { %v2395_v62 = vadd.f32 %v2393_v60, %v3336_v58 }
 0x554   :  { %2396 = vst [vmem:[#allocation11] sm:$0xff] %v2394_v61 }
 0x555   :  { %2397 = vst [vmem:[#allocation11 + $0x8] sm:$0xff] %v2395_v62 }
 0x556   :  { %3108 = shalt.err (!%p3105_p2)
}
 0x557   :  { %s3109_s19 = scalar_lea.hbm %s3413_s10, 256 }
 0x558   :  { %p3110_p3 = scmp.ne.s32.totalorder %s3413_s10, %s3109_s19  ;;  %p3113_p4 = scmp.lt.u32.totalorder %s3109_s19, %s3413_s10 }
 0x55a   :  { %p3115_p5 = pnand %p3113_p4, %p3110_p3 }
 0x55c   :  { %3118 = shalt.err (!%p3115_p5)
}
 0x55d   :  { %2407 = dma.vmem_to_hbm [thread:$0]  %s2405_s17, 256, %s3413_s10, [#allocation4]  }
 0x55e   :  { %3125 = dma.done.wait [#allocation4], 256  }
 0x55f   :  { %3126 = vsyncadd [#allocation4], 4294967040 }
 0x560   :  { %2411 = vsyncpa [#allocation3], 1 }
 0x561   :  { %2412 = vsyncpa [#allocation6], 1 }
 0x562   :  { %2413 = vsyncpa [#allocation9], 1 }
 0x563   :  { %2414 = vsyncpa [#allocation4], 1 }

</bundles_post_ra>
